<compile_context>
chip_gen: v5e
topology: v5e:2x2
jax: 0.10.0
libtpu: 0.0.40
codegen_flags: <defaults>
</compile_context>

<pallas_src>
import functools

import jax
import jax.numpy as jnp
from jax.experimental import pallas as pl
from jax.experimental.pallas import tpu as pltpu


def _round_up(x, m):
    return ((x + m - 1) // m) * m


# ---------------------------------------------------------------------------
# Kernel: T GRU-decoder steps, everything resident in VMEM.
# ---------------------------------------------------------------------------
def decoder_seq_kernel(tok_ref,          # SMEM (T,) int32 token ids
                       emb_ref,          # VMEM (V, Hp)  embedding table
                       wi_ref,           # VMEM (Hp, 3Hp) fused [W_ir|W_iz|W_in]
                       wh_ref,           # VMEM (Hp, 3Hp) fused [W_hr|W_hz|W_hn]
                       bias_ref,         # VMEM (2, 3Hp) row0=[bir+bhr|biz+bhz|bin], row1=[0|0|bhn]
                       wout_ref,         # VMEM (Hp, Vp)
                       bout_ref,         # VMEM (1, Vp)  (padding lanes = -1e30)
                       h0_ref,           # VMEM (1, Hp)  initial hidden
                       logp_ref,         # VMEM out (T, Vp)
                       hout_ref,         # VMEM out (1, Hp)
                       x_scr,            # VMEM scratch (T, Hp)  relu(embed)
                       gi_scr,           # VMEM scratch (T, 3Hp) input-side gates
                       hs_scr,           # VMEM scratch (T, Hp)  all hidden states
                       *, Hp, T):
    dot = lambda a, b: jnp.dot(a, b, preferred_element_type=jnp.float32)

    # ---- Phase 1: gather + ReLU all T embedding rows (token-only work). ----
    def gather(t, carry):
        tok = tok_ref[t]
        x_scr[pl.ds(t, 1), :] = jnp.maximum(emb_ref[pl.ds(tok, 1), :], 0.0)
        return carry

    jax.lax.fori_loop(0, T, gather, 0, unroll=True)

    # ---- Phase 2: hoisted input-side gate matmul (one M=T MXU op). ---------
    gi_scr[...] = dot(x_scr[...], wi_ref[...]) + bias_ref[0:1, :]

    # ---- Phase 3: the recurrence; only h @ W_h stays in the serial chain. --
    wh = wh_ref[...]
    b_h = bias_ref[1:2, :]

    def step(t, h):
        gi = gi_scr[pl.ds(t, 1), :]                              # (1, 3Hp)
        gh = dot(h, wh) + b_h                                    # (1, 3Hp)
        r = jax.nn.sigmoid(gi[:, 0:Hp] + gh[:, 0:Hp])
        z = jax.nn.sigmoid(gi[:, Hp:2 * Hp] + gh[:, Hp:2 * Hp])
        n = jnp.tanh(gi[:, 2 * Hp:3 * Hp] + r * gh[:, 2 * Hp:3 * Hp])
        h_new = (1.0 - z) * n + z * h
        hs_scr[pl.ds(t, 1), :] = h_new
        return h_new

    h_final = jax.lax.fori_loop(0, T, step, h0_ref[...], unroll=min(T, 8))
    hout_ref[...] = h_final

    # ---- Phase 4: deferred output projection + batched log-softmax. --------
    logits = dot(hs_scr[...], wout_ref[...]) + bout_ref[...]     # (T, Vp)
    m = jnp.max(logits, axis=-1, keepdims=True)
    lse = m + jnp.log(jnp.sum(jnp.exp(logits - m), axis=-1, keepdims=True))
    logp_ref[...] = logits - lse                                 # full-tile vst


# ---------------------------------------------------------------------------
# Parameters (logical, PyTorch-style) and host-side packing / padding.
# ---------------------------------------------------------------------------
def init_params(key, hidden_size, output_size):
    """Deterministic synthetic params, PyTorch-style uniform(-1/sqrt(H), 1/sqrt(H))."""
    H, V = hidden_size, output_size
    k = 1.0 / jnp.sqrt(jnp.float32(H))
    keys = jax.random.split(key, 16)
    u = lambda kk, shape: jax.random.uniform(kk, shape, jnp.float32, -k, k)
    return {
        "hidden_size": H,
        "output_size": V,
        # nn.Embedding(output_size, hidden_size): N(0, 1)
        "embedding": jax.random.normal(keys[0], (V, H), jnp.float32),
        # GRU weights stored transposed: (in_features, out_features)
        "w_ir": u(keys[1], (H, H)), "w_iz": u(keys[2], (H, H)), "w_in": u(keys[3], (H, H)),
        "w_hr": u(keys[4], (H, H)), "w_hz": u(keys[5], (H, H)), "w_hn": u(keys[6], (H, H)),
        "b_ir": u(keys[7], (1, H)), "b_iz": u(keys[8], (1, H)), "b_in": u(keys[9], (1, H)),
        "b_hr": u(keys[10], (1, H)), "b_hz": u(keys[11], (1, H)), "b_hn": u(keys[12], (1, H)),
        # nn.Linear(hidden_size, output_size), stored transposed (H, V)
        "w_out": u(keys[13], (H, V)),
        "b_out": u(keys[14], (1, V)),
    }


def pack_params(p):
    """Fuse / pad the logical params into lane-dense kernel operands (done once)."""
    H, V = p["hidden_size"], p["output_size"]
    Hp = _round_up(H, 128)
    Vp = _round_up(V, 128)

    def pad_w(w):   # (H, H) -> (Hp, Hp), zero padding
        return jnp.zeros((Hp, Hp), jnp.float32).at[:H, :H].set(w)

    def pad_b(b):   # (1, H) -> (1, Hp), zero padding
        return jnp.zeros((1, Hp), jnp.float32).at[:, :H].set(b)

    w_i = jnp.concatenate([pad_w(p["w_ir"]), pad_w(p["w_iz"]), pad_w(p["w_in"])], axis=1)
    w_h = jnp.concatenate([pad_w(p["w_hr"]), pad_w(p["w_hz"]), pad_w(p["w_hn"])], axis=1)

    # Row 0: input-side biases with b_ir+b_hr, b_iz+b_hz pre-summed; b_in alone.
    # Row 1: only b_hn (must stay inside the r-gated term).
    zeros = jnp.zeros((1, Hp), jnp.float32)
    b_row0 = jnp.concatenate([pad_b(p["b_ir"] + p["b_hr"]),
                              pad_b(p["b_iz"] + p["b_hz"]),
                              pad_b(p["b_in"])], axis=1)
    b_row1 = jnp.concatenate([zeros, zeros, pad_b(p["b_hn"])], axis=1)
    bias = jnp.concatenate([b_row0, b_row1], axis=0)                 # (2, 3Hp)

    emb = jnp.zeros((V, Hp), jnp.float32).at[:, :H].set(p["embedding"])
    w_out = jnp.zeros((Hp, Vp), jnp.float32).at[:H, :V].set(p["w_out"])
    # Padded vocab lanes get a huge negative bias so they vanish in log-softmax.
    b_out = jnp.full((1, Vp), -1e30, jnp.float32).at[:, :V].set(p["b_out"])

    return {"H": H, "V": V, "Hp": Hp, "Vp": Vp,
            "embedding": emb, "w_i": w_i, "w_h": w_h, "bias": bias,
            "w_out": w_out, "b_out": b_out}


# ---------------------------------------------------------------------------
# Wrapper: one pallas_call decodes T teacher-forced timesteps.
# ---------------------------------------------------------------------------
def decoder_forward(tokens, hidden, packed):
    """tokens: (T,) int32; hidden: (1,1,H). Returns (logp (T,V), new_hidden (1,1,H)).
    T=1 is exactly DecoderRNN.forward; T>1 is T sequential forward() calls."""
    H, V, Hp, Vp = packed["H"], packed["V"], packed["Hp"], packed["Vp"]
    T = int(tokens.shape[0])

    # Host-side clamp: no unchecked OOB VMEM reads from bad token ids.
    tok = jnp.clip(tokens.astype(jnp.int32), 0, V - 1)

    h0 = jnp.zeros((1, Hp), jnp.float32).at[:, :H].set(hidden.reshape(1, H))

    vmem = pl.BlockSpec(memory_space=pltpu.MemorySpace.VMEM)
    smem = pl.BlockSpec(memory_space=pltpu.MemorySpace.SMEM)

    kernel = functools.partial(decoder_seq_kernel, Hp=Hp, T=T)

    # VMEM budget: weights + outputs + scratch (no grid -> no double-buffering),
    # with 2x headroom, floored at 8 MiB, capped at the v7x 64 MiB physical size.
    weight_bytes = 4 * (V * Hp + 2 * Hp * 3 * Hp + 2 * 3 * Hp + Hp * Vp + Vp + Hp)
    io_bytes = 4 * (T * Vp + Hp)
    scratch_bytes = 4 * (T * Hp + T * 3 * Hp + T * Hp)
    vmem_budget = min(64 * 1024 * 1024,
                      max(8 * 1024 * 1024, 2 * (weight_bytes + io_bytes + scratch_bytes)))

    cost = pl.CostEstimate(
        flops=(2 * T * Hp * 3 * Hp            # hoisted GI matmul
               + T * 2 * Hp * 3 * Hp          # recurrent gh matmuls
               + 2 * T * Hp * Vp),            # deferred projection
        transcendentals=T * (3 * Hp + 2 * Vp),
        bytes_accessed=weight_bytes + io_bytes + scratch_bytes,
    )

    logp_p, h_p = pl.pallas_call(
        kernel,
        out_shape=(jax.ShapeDtypeStruct((T, Vp), jnp.float32),
                   jax.ShapeDtypeStruct((1, Hp), jnp.float32)),
        in_specs=[smem, vmem, vmem, vmem, vmem, vmem, vmem, vmem],
        out_specs=(vmem, vmem),
        scratch_shapes=[pltpu.VMEM((T, Hp), jnp.float32),       # x (relu-embed)
                        pltpu.VMEM((T, 3 * Hp), jnp.float32),   # GI
                        pltpu.VMEM((T, Hp), jnp.float32)],      # hidden states
        compiler_params=pltpu.CompilerParams(vmem_limit_bytes=vmem_budget),
        cost_estimate=cost,
    )(tok, packed["embedding"], packed["w_i"], packed["w_h"],
      packed["bias"], packed["w_out"], packed["b_out"], h0)

    return logp_p[:, :V], h_p[:, :H].reshape(1, 1, H)


# ---------------------------------------------------------------------------
# Pure-JAX reference: exact single-step DecoderRNN.forward semantics.
# ---------------------------------------------------------------------------
def decoder_forward_ref(token, hidden, params):
    H, V = params["hidden_size"], params["output_size"]
    x = jnp.maximum(params["embedding"][token].reshape(1, H), 0.0)
    h = hidden.reshape(1, H)
    r = jax.nn.sigmoid(x @ params["w_ir"] + params["b_ir"] + h @ params["w_hr"] + params["b_hr"])
    z = jax.nn.sigmoid(x @ params["w_iz"] + params["b_iz"] + h @ params["w_hz"] + params["b_hz"])
    n = jnp.tanh(x @ params["w_in"] + params["b_in"] + r * (h @ params["w_hn"] + params["b_hn"]))
    h_new = (1.0 - z) * n + z * h
    logits = h_new @ params["w_out"] + params["b_out"]
    return jax.nn.log_softmax(logits, axis=-1), h_new.reshape(1, 1, H)


if __name__ == "__main__":
    hidden_size = 32
    output_size = 64   # vocab size
    T = 8              # decode steps fused into one pallas_call

    key = jax.random.PRNGKey(0)
    params = init_params(key, hidden_size, output_size)
    packed = pack_params(params)

    tokens = jax.random.randint(jax.random.PRNGKey(1), (T,), 0, output_size, dtype=jnp.int32)
    hidden0 = jnp.zeros((1, 1, hidden_size), jnp.float32)

    # Multi-step fused decode (teacher-forced tokens).
    logp_seq, h_new = decoder_forward(tokens, hidden0, packed)
    logp_seq = jax.block_until_ready(logp_seq)
    h_new = jax.block_until_ready(h_new)
    assert logp_seq.shape == (T, output_size)
    assert h_new.shape == (1, 1, hidden_size)

    # Reference: T sequential calls of the original module's forward().
    h_ref = hidden0
    ref_rows = []
    for t in range(T):
        lp, h_ref = decoder_forward_ref(int(tokens[t]), h_ref, params)
        ref_rows.append(lp)
    logp_ref = jnp.concatenate(ref_rows, axis=0)
    assert jnp.allclose(logp_seq, logp_ref, atol=1e-5, rtol=1e-5)
    assert jnp.allclose(h_new, h_ref, atol=1e-5, rtol=1e-5)

    # Single-step call (T=1): exact DecoderRNN.forward semantics.
    lp1, h1 = decoder_forward(tokens[:1], hidden0, packed)
    lp1_ref, h1_ref = decoder_forward_ref(int(tokens[0]), hidden0, params)
    assert jnp.allclose(lp1, lp1_ref, atol=1e-5, rtol=1e-5)
    assert jnp.allclose(h1, h1_ref, atol=1e-5, rtol=1e-5)

    print("KERNEL_OK")
</pallas_src>

<mosaic_0001>
module attributes {stable_mosaic.version = 11 : i64} {
  func.func @decoder_seq_kernel(%arg0: memref<8xi32, #tpu.memory_space<smem>>, %arg1: memref<64x128xf32, #tpu.memory_space<vmem>>, %arg2: memref<128x384xf32, #tpu.memory_space<vmem>>, %arg3: memref<128x384xf32, #tpu.memory_space<vmem>>, %arg4: memref<2x384xf32, #tpu.memory_space<vmem>>, %arg5: memref<128x128xf32, #tpu.memory_space<vmem>>, %arg6: memref<1x128xf32, #tpu.memory_space<vmem>>, %arg7: memref<1x128xf32, #tpu.memory_space<vmem>>, %arg8: memref<8x128xf32, #tpu.memory_space<vmem>>, %arg9: memref<1x128xf32, #tpu.memory_space<vmem>>, %arg10: memref<8x128xf32, #tpu.memory_space<vmem>>, %arg11: memref<8x384xf32, #tpu.memory_space<vmem>>, %arg12: memref<8x128xf32, #tpu.memory_space<vmem>>) attributes {dimension_semantics = [], scalar_prefetch = 0 : i64, scratch_operands = 3 : i64, tpu.core_type = #tpu.core_type<tc>} {
    %c0_i32 = arith.constant 0 : i32
    %0 = arith.index_cast %c0_i32 : i32 to index
    %1 = memref.load %arg0[%0] : memref<8xi32, #tpu.memory_space<smem>>
    %2 = arith.index_cast %1 : i32 to index
    %c0 = arith.constant 0 : index
    %3 = vector.load %arg1[%2, %c0] : memref<64x128xf32, #tpu.memory_space<vmem>>, vector<1x128xf32>
    %cst = arith.constant 0.000000e+00 : f32
    %4 = vector.broadcast %cst : f32 to vector<1x128xf32>
    %5 = arith.maximumf %3, %4 : vector<1x128xf32>
    %6 = arith.index_cast %c0_i32 : i32 to index
    %c0_0 = arith.constant 0 : index
    %7 = vector.load %arg10[%6, %c0_0] : memref<8x128xf32, #tpu.memory_space<vmem>>, vector<1x128xf32>
    tpu.vector_store %arg10[%6, %c0_0], %5 {strides = array<i32>} : memref<8x128xf32, #tpu.memory_space<vmem>>, vector<1x128xf32>,
    %c1_i32 = arith.constant 1 : i32
    %8 = arith.index_cast %c1_i32 : i32 to index
    %9 = memref.load %arg0[%8] : memref<8xi32, #tpu.memory_space<smem>>
    %10 = arith.index_cast %9 : i32 to index
    %c0_1 = arith.constant 0 : index
    %11 = vector.load %arg1[%10, %c0_1] : memref<64x128xf32, #tpu.memory_space<vmem>>, vector<1x128xf32>
    %cst_2 = arith.constant 0.000000e+00 : f32
    %12 = vector.broadcast %cst_2 : f32 to vector<1x128xf32>
    %13 = arith.maximumf %11, %12 : vector<1x128xf32>
    %14 = arith.index_cast %c1_i32 : i32 to index
    %c0_3 = arith.constant 0 : index
    %15 = vector.load %arg10[%14, %c0_3] : memref<8x128xf32, #tpu.memory_space<vmem>>, vector<1x128xf32>
    tpu.vector_store %arg10[%14, %c0_3], %13 {strides = array<i32>} : memref<8x128xf32, #tpu.memory_space<vmem>>, vector<1x128xf32>,
    %c2_i32 = arith.constant 2 : i32
    %16 = arith.index_cast %c2_i32 : i32 to index
    %17 = memref.load %arg0[%16] : memref<8xi32, #tpu.memory_space<smem>>
    %18 = arith.index_cast %17 : i32 to index
    %c0_4 = arith.constant 0 : index
    %19 = vector.load %arg1[%18, %c0_4] : memref<64x128xf32, #tpu.memory_space<vmem>>, vector<1x128xf32>
    %cst_5 = arith.constant 0.000000e+00 : f32
    %20 = vector.broadcast %cst_5 : f32 to vector<1x128xf32>
    %21 = arith.maximumf %19, %20 : vector<1x128xf32>
    %22 = arith.index_cast %c2_i32 : i32 to index
    %c0_6 = arith.constant 0 : index
    %23 = vector.load %arg10[%22, %c0_6] : memref<8x128xf32, #tpu.memory_space<vmem>>, vector<1x128xf32>
    tpu.vector_store %arg10[%22, %c0_6], %21 {strides = array<i32>} : memref<8x128xf32, #tpu.memory_space<vmem>>, vector<1x128xf32>,
    %c3_i32 = arith.constant 3 : i32
    %24 = arith.index_cast %c3_i32 : i32 to index
    %25 = memref.load %arg0[%24] : memref<8xi32, #tpu.memory_space<smem>>
    %26 = arith.index_cast %25 : i32 to index
    %c0_7 = arith.constant 0 : index
    %27 = vector.load %arg1[%26, %c0_7] : memref<64x128xf32, #tpu.memory_space<vmem>>, vector<1x128xf32>
    %cst_8 = arith.constant 0.000000e+00 : f32
    %28 = vector.broadcast %cst_8 : f32 to vector<1x128xf32>
    %29 = arith.maximumf %27, %28 : vector<1x128xf32>
    %30 = arith.index_cast %c3_i32 : i32 to index
    %c0_9 = arith.constant 0 : index
    %31 = vector.load %arg10[%30, %c0_9] : memref<8x128xf32, #tpu.memory_space<vmem>>, vector<1x128xf32>
    tpu.vector_store %arg10[%30, %c0_9], %29 {strides = array<i32>} : memref<8x128xf32, #tpu.memory_space<vmem>>, vector<1x128xf32>,
    %c4_i32 = arith.constant 4 : i32
    %32 = arith.index_cast %c4_i32 : i32 to index
    %33 = memref.load %arg0[%32] : memref<8xi32, #tpu.memory_space<smem>>
    %34 = arith.index_cast %33 : i32 to index
    %c0_10 = arith.constant 0 : index
    %35 = vector.load %arg1[%34, %c0_10] : memref<64x128xf32, #tpu.memory_space<vmem>>, vector<1x128xf32>
    %cst_11 = arith.constant 0.000000e+00 : f32
    %36 = vector.broadcast %cst_11 : f32 to vector<1x128xf32>
    %37 = arith.maximumf %35, %36 : vector<1x128xf32>
    %38 = arith.index_cast %c4_i32 : i32 to index
    %c0_12 = arith.constant 0 : index
    %39 = vector.load %arg10[%38, %c0_12] : memref<8x128xf32, #tpu.memory_space<vmem>>, vector<1x128xf32>
    tpu.vector_store %arg10[%38, %c0_12], %37 {strides = array<i32>} : memref<8x128xf32, #tpu.memory_space<vmem>>, vector<1x128xf32>,
    %c5_i32 = arith.constant 5 : i32
    %40 = arith.index_cast %c5_i32 : i32 to index
    %41 = memref.load %arg0[%40] : memref<8xi32, #tpu.memory_space<smem>>
    %42 = arith.index_cast %41 : i32 to index
    %c0_13 = arith.constant 0 : index
    %43 = vector.load %arg1[%42, %c0_13] : memref<64x128xf32, #tpu.memory_space<vmem>>, vector<1x128xf32>
    %cst_14 = arith.constant 0.000000e+00 : f32
    %44 = vector.broadcast %cst_14 : f32 to vector<1x128xf32>
    %45 = arith.maximumf %43, %44 : vector<1x128xf32>
    %46 = arith.index_cast %c5_i32 : i32 to index
    %c0_15 = arith.constant 0 : index
    %47 = vector.load %arg10[%46, %c0_15] : memref<8x128xf32, #tpu.memory_space<vmem>>, vector<1x128xf32>
    tpu.vector_store %arg10[%46, %c0_15], %45 {strides = array<i32>} : memref<8x128xf32, #tpu.memory_space<vmem>>, vector<1x128xf32>,
    %c6_i32 = arith.constant 6 : i32
    %48 = arith.index_cast %c6_i32 : i32 to index
    %49 = memref.load %arg0[%48] : memref<8xi32, #tpu.memory_space<smem>>
    %50 = arith.index_cast %49 : i32 to index
    %c0_16 = arith.constant 0 : index
    %51 = vector.load %arg1[%50, %c0_16] : memref<64x128xf32, #tpu.memory_space<vmem>>, vector<1x128xf32>
    %cst_17 = arith.constant 0.000000e+00 : f32
    %52 = vector.broadcast %cst_17 : f32 to vector<1x128xf32>
    %53 = arith.maximumf %51, %52 : vector<1x128xf32>
    %54 = arith.index_cast %c6_i32 : i32 to index
    %c0_18 = arith.constant 0 : index
    %55 = vector.load %arg10[%54, %c0_18] : memref<8x128xf32, #tpu.memory_space<vmem>>, vector<1x128xf32>
    tpu.vector_store %arg10[%54, %c0_18], %53 {strides = array<i32>} : memref<8x128xf32, #tpu.memory_space<vmem>>, vector<1x128xf32>,
    %c7_i32 = arith.constant 7 : i32
    %56 = arith.index_cast %c7_i32 : i32 to index
    %57 = memref.load %arg0[%56] : memref<8xi32, #tpu.memory_space<smem>>
    %58 = arith.index_cast %57 : i32 to index
    %c0_19 = arith.constant 0 : index
    %59 = vector.load %arg1[%58, %c0_19] : memref<64x128xf32, #tpu.memory_space<vmem>>, vector<1x128xf32>
    %cst_20 = arith.constant 0.000000e+00 : f32
    %60 = vector.broadcast %cst_20 : f32 to vector<1x128xf32>
    %61 = arith.maximumf %59, %60 : vector<1x128xf32>
    %62 = arith.index_cast %c7_i32 : i32 to index
    %c0_21 = arith.constant 0 : index
    %63 = vector.load %arg10[%62, %c0_21] : memref<8x128xf32, #tpu.memory_space<vmem>>, vector<1x128xf32>
    tpu.vector_store %arg10[%62, %c0_21], %61 {strides = array<i32>} : memref<8x128xf32, #tpu.memory_space<vmem>>, vector<1x128xf32>,
    %c8_i32 = arith.constant 8 : i32
    %c0_22 = arith.constant 0 : index
    %c0_23 = arith.constant 0 : index
    %64 = vector.load %arg10[%c0_22, %c0_23] : memref<8x128xf32, #tpu.memory_space<vmem>>, vector<8x128xf32>
    %c0_24 = arith.constant 0 : index
    %c0_25 = arith.constant 0 : index
    %65 = vector.load %arg2[%c0_24, %c0_25] : memref<128x384xf32, #tpu.memory_space<vmem>>, vector<128x384xf32>
    %cst_26 = arith.constant dense<0.000000e+00> : vector<8x384xf32>
    %66 = tpu.matmul %64, %65, %cst_26 {dimension_numbers = #tpu.dot_dimension_numbers<[1], [0], [0], [1], [0, 0, 1, 1], [], []>} : vector<8x128xf32>, vector<128x384xf32>, vector<8x384xf32> -> vector<8x384xf32>
    %c0_27 = arith.constant 0 : index
    %c0_28 = arith.constant 0 : index
    %67 = vector.load %arg4[%c0_27, %c0_28] : memref<2x384xf32, #tpu.memory_space<vmem>>, vector<1x384xf32>
    %68 = vector.broadcast %67 : vector<1x384xf32> to vector<8x384xf32>
    %69 = arith.addf %66, %68 : vector<8x384xf32>
    %c0_29 = arith.constant 0 : index
    %c0_30 = arith.constant 0 : index
    %70 = vector.load %arg11[%c0_29, %c0_30] : memref<8x384xf32, #tpu.memory_space<vmem>>, vector<8x384xf32>
    tpu.vector_store %arg11[%c0_29, %c0_30], %69 {strides = array<i32>} : memref<8x384xf32, #tpu.memory_space<vmem>>, vector<8x384xf32>,
    %c0_31 = arith.constant 0 : index
    %c0_32 = arith.constant 0 : index
    %71 = vector.load %arg3[%c0_31, %c0_32] : memref<128x384xf32, #tpu.memory_space<vmem>>, vector<128x384xf32>
    %c1 = arith.constant 1 : index
    %c0_33 = arith.constant 0 : index
    %72 = vector.load %arg4[%c1, %c0_33] : memref<2x384xf32, #tpu.memory_space<vmem>>, vector<1x384xf32>
    %c0_34 = arith.constant 0 : index
    %c0_35 = arith.constant 0 : index
    %73 = vector.load %arg7[%c0_34, %c0_35] : memref<1x128xf32, #tpu.memory_space<vmem>>, vector<1x128xf32>
    %c0_i32_36 = arith.constant 0 : i32
    %74 = arith.index_cast %c0_i32_36 : i32 to index
    %c0_37 = arith.constant 0 : index
    %75 = vector.load %arg11[%74, %c0_37] : memref<8x384xf32, #tpu.memory_space<vmem>>, vector<1x384xf32>
    %cst_38 = arith.constant dense<0.000000e+00> : vector<1x384xf32>
    %76 = tpu.matmul %73, %71, %cst_38 {dimension_numbers = #tpu.dot_dimension_numbers<[1], [0], [0], [1], [0, 0, 1, 1], [], []>} : vector<1x128xf32>, vector<128x384xf32>, vector<1x384xf32> -> vector<1x384xf32>
    %77 = arith.addf %76, %72 : vector<1x384xf32>
    %78 = vector.extract_strided_slice %75 {offsets = [0, 0], sizes = [1, 128], strides = [1, 1]} : vector<1x384xf32> to vector<1x128xf32>
    %79 = vector.extract_strided_slice %77 {offsets = [0, 0], sizes = [1, 128], strides = [1, 1]} : vector<1x384xf32> to vector<1x128xf32>
    %80 = arith.addf %78, %79 : vector<1x128xf32>
    %81 = arith.negf %80 : vector<1x128xf32>
    %82 = math.exp %81 : vector<1x128xf32>
    %cst_39 = arith.constant 1.000000e+00 : f32
    %83 = vector.broadcast %cst_39 : f32 to vector<1x128xf32>
    %84 = arith.addf %83, %82 : vector<1x128xf32>
    %85 = arith.divf %83, %84 : vector<1x128xf32>
    %86 = vector.extract_strided_slice %75 {offsets = [0, 128], sizes = [1, 128], strides = [1, 1]} : vector<1x384xf32> to vector<1x128xf32>
    %87 = vector.extract_strided_slice %77 {offsets = [0, 128], sizes = [1, 128], strides = [1, 1]} : vector<1x384xf32> to vector<1x128xf32>
    %88 = arith.addf %86, %87 : vector<1x128xf32>
    %89 = arith.negf %88 : vector<1x128xf32>
    %90 = math.exp %89 : vector<1x128xf32>
    %cst_40 = arith.constant 1.000000e+00 : f32
    %91 = vector.broadcast %cst_40 : f32 to vector<1x128xf32>
    %92 = arith.addf %91, %90 : vector<1x128xf32>
    %93 = arith.divf %91, %92 : vector<1x128xf32>
    %94 = vector.extract_strided_slice %75 {offsets = [0, 256], sizes = [1, 128], strides = [1, 1]} : vector<1x384xf32> to vector<1x128xf32>
    %95 = vector.extract_strided_slice %77 {offsets = [0, 256], sizes = [1, 128], strides = [1, 1]} : vector<1x384xf32> to vector<1x128xf32>
    %96 = arith.mulf %85, %95 : vector<1x128xf32>
    %97 = arith.addf %94, %96 : vector<1x128xf32>
    %98 = math.tanh %97 : vector<1x128xf32>
    %cst_41 = arith.constant 1.000000e+00 : f32
    %99 = vector.broadcast %cst_41 : f32 to vector<1x128xf32>
    %100 = arith.subf %99, %93 : vector<1x128xf32>
    %101 = arith.mulf %100, %98 : vector<1x128xf32>
    %102 = arith.mulf %93, %73 : vector<1x128xf32>
    %103 = arith.addf %101, %102 : vector<1x128xf32>
    %104 = arith.index_cast %c0_i32_36 : i32 to index
    %c0_42 = arith.constant 0 : index
    %105 = vector.load %arg12[%104, %c0_42] : memref<8x128xf32, #tpu.memory_space<vmem>>, vector<1x128xf32>
    tpu.vector_store %arg12[%104, %c0_42], %103 {strides = array<i32>} : memref<8x128xf32, #tpu.memory_space<vmem>>, vector<1x128xf32>,
    %c1_i32_43 = arith.constant 1 : i32
    %106 = arith.index_cast %c1_i32_43 : i32 to index
    %c0_44 = arith.constant 0 : index
    %107 = vector.load %arg11[%106, %c0_44] : memref<8x384xf32, #tpu.memory_space<vmem>>, vector<1x384xf32>
    %cst_45 = arith.constant dense<0.000000e+00> : vector<1x384xf32>
    %108 = tpu.matmul %103, %71, %cst_45 {dimension_numbers = #tpu.dot_dimension_numbers<[1], [0], [0], [1], [0, 0, 1, 1], [], []>} : vector<1x128xf32>, vector<128x384xf32>, vector<1x384xf32> -> vector<1x384xf32>
    %109 = arith.addf %108, %72 : vector<1x384xf32>
    %110 = vector.extract_strided_slice %107 {offsets = [0, 0], sizes = [1, 128], strides = [1, 1]} : vector<1x384xf32> to vector<1x128xf32>
    %111 = vector.extract_strided_slice %109 {offsets = [0, 0], sizes = [1, 128], strides = [1, 1]} : vector<1x384xf32> to vector<1x128xf32>
    %112 = arith.addf %110, %111 : vector<1x128xf32>
    %113 = arith.negf %112 : vector<1x128xf32>
    %114 = math.exp %113 : vector<1x128xf32>
    %cst_46 = arith.constant 1.000000e+00 : f32
    %115 = vector.broadcast %cst_46 : f32 to vector<1x128xf32>
    %116 = arith.addf %115, %114 : vector<1x128xf32>
    %117 = arith.divf %115, %116 : vector<1x128xf32>
    %118 = vector.extract_strided_slice %107 {offsets = [0, 128], sizes = [1, 128], strides = [1, 1]} : vector<1x384xf32> to vector<1x128xf32>
    %119 = vector.extract_strided_slice %109 {offsets = [0, 128], sizes = [1, 128], strides = [1, 1]} : vector<1x384xf32> to vector<1x128xf32>
    %120 = arith.addf %118, %119 : vector<1x128xf32>
    %121 = arith.negf %120 : vector<1x128xf32>
    %122 = math.exp %121 : vector<1x128xf32>
    %cst_47 = arith.constant 1.000000e+00 : f32
    %123 = vector.broadcast %cst_47 : f32 to vector<1x128xf32>
    %124 = arith.addf %123, %122 : vector<1x128xf32>
    %125 = arith.divf %123, %124 : vector<1x128xf32>
    %126 = vector.extract_strided_slice %107 {offsets = [0, 256], sizes = [1, 128], strides = [1, 1]} : vector<1x384xf32> to vector<1x128xf32>
    %127 = vector.extract_strided_slice %109 {offsets = [0, 256], sizes = [1, 128], strides = [1, 1]} : vector<1x384xf32> to vector<1x128xf32>
    %128 = arith.mulf %117, %127 : vector<1x128xf32>
    %129 = arith.addf %126, %128 : vector<1x128xf32>
    %130 = math.tanh %129 : vector<1x128xf32>
    %cst_48 = arith.constant 1.000000e+00 : f32
    %131 = vector.broadcast %cst_48 : f32 to vector<1x128xf32>
    %132 = arith.subf %131, %125 : vector<1x128xf32>
    %133 = arith.mulf %132, %130 : vector<1x128xf32>
    %134 = arith.mulf %125, %103 : vector<1x128xf32>
    %135 = arith.addf %133, %134 : vector<1x128xf32>
    %136 = arith.index_cast %c1_i32_43 : i32 to index
    %c0_49 = arith.constant 0 : index
    %137 = vector.load %arg12[%136, %c0_49] : memref<8x128xf32, #tpu.memory_space<vmem>>, vector<1x128xf32>
    tpu.vector_store %arg12[%136, %c0_49], %135 {strides = array<i32>} : memref<8x128xf32, #tpu.memory_space<vmem>>, vector<1x128xf32>,
    %c2_i32_50 = arith.constant 2 : i32
    %138 = arith.index_cast %c2_i32_50 : i32 to index
    %c0_51 = arith.constant 0 : index
    %139 = vector.load %arg11[%138, %c0_51] : memref<8x384xf32, #tpu.memory_space<vmem>>, vector<1x384xf32>
    %cst_52 = arith.constant dense<0.000000e+00> : vector<1x384xf32>
    %140 = tpu.matmul %135, %71, %cst_52 {dimension_numbers = #tpu.dot_dimension_numbers<[1], [0], [0], [1], [0, 0, 1, 1], [], []>} : vector<1x128xf32>, vector<128x384xf32>, vector<1x384xf32> -> vector<1x384xf32>
    %141 = arith.addf %140, %72 : vector<1x384xf32>
    %142 = vector.extract_strided_slice %139 {offsets = [0, 0], sizes = [1, 128], strides = [1, 1]} : vector<1x384xf32> to vector<1x128xf32>
    %143 = vector.extract_strided_slice %141 {offsets = [0, 0], sizes = [1, 128], strides = [1, 1]} : vector<1x384xf32> to vector<1x128xf32>
    %144 = arith.addf %142, %143 : vector<1x128xf32>
    %145 = arith.negf %144 : vector<1x128xf32>
    %146 = math.exp %145 : vector<1x128xf32>
    %cst_53 = arith.constant 1.000000e+00 : f32
    %147 = vector.broadcast %cst_53 : f32 to vector<1x128xf32>
    %148 = arith.addf %147, %146 : vector<1x128xf32>
    %149 = arith.divf %147, %148 : vector<1x128xf32>
    %150 = vector.extract_strided_slice %139 {offsets = [0, 128], sizes = [1, 128], strides = [1, 1]} : vector<1x384xf32> to vector<1x128xf32>
    %151 = vector.extract_strided_slice %141 {offsets = [0, 128], sizes = [1, 128], strides = [1, 1]} : vector<1x384xf32> to vector<1x128xf32>
    %152 = arith.addf %150, %151 : vector<1x128xf32>
    %153 = arith.negf %152 : vector<1x128xf32>
    %154 = math.exp %153 : vector<1x128xf32>
    %cst_54 = arith.constant 1.000000e+00 : f32
    %155 = vector.broadcast %cst_54 : f32 to vector<1x128xf32>
    %156 = arith.addf %155, %154 : vector<1x128xf32>
    %157 = arith.divf %155, %156 : vector<1x128xf32>
    %158 = vector.extract_strided_slice %139 {offsets = [0, 256], sizes = [1, 128], strides = [1, 1]} : vector<1x384xf32> to vector<1x128xf32>
    %159 = vector.extract_strided_slice %141 {offsets = [0, 256], sizes = [1, 128], strides = [1, 1]} : vector<1x384xf32> to vector<1x128xf32>
    %160 = arith.mulf %149, %159 : vector<1x128xf32>
    %161 = arith.addf %158, %160 : vector<1x128xf32>
    %162 = math.tanh %161 : vector<1x128xf32>
    %cst_55 = arith.constant 1.000000e+00 : f32
    %163 = vector.broadcast %cst_55 : f32 to vector<1x128xf32>
    %164 = arith.subf %163, %157 : vector<1x128xf32>
    %165 = arith.mulf %164, %162 : vector<1x128xf32>
    %166 = arith.mulf %157, %135 : vector<1x128xf32>
    %167 = arith.addf %165, %166 : vector<1x128xf32>
    %168 = arith.index_cast %c2_i32_50 : i32 to index
    %c0_56 = arith.constant 0 : index
    %169 = vector.load %arg12[%168, %c0_56] : memref<8x128xf32, #tpu.memory_space<vmem>>, vector<1x128xf32>
    tpu.vector_store %arg12[%168, %c0_56], %167 {strides = array<i32>} : memref<8x128xf32, #tpu.memory_space<vmem>>, vector<1x128xf32>,
    %c3_i32_57 = arith.constant 3 : i32
    %170 = arith.index_cast %c3_i32_57 : i32 to index
    %c0_58 = arith.constant 0 : index
    %171 = vector.load %arg11[%170, %c0_58] : memref<8x384xf32, #tpu.memory_space<vmem>>, vector<1x384xf32>
    %cst_59 = arith.constant dense<0.000000e+00> : vector<1x384xf32>
    %172 = tpu.matmul %167, %71, %cst_59 {dimension_numbers = #tpu.dot_dimension_numbers<[1], [0], [0], [1], [0, 0, 1, 1], [], []>} : vector<1x128xf32>, vector<128x384xf32>, vector<1x384xf32> -> vector<1x384xf32>
    %173 = arith.addf %172, %72 : vector<1x384xf32>
    %174 = vector.extract_strided_slice %171 {offsets = [0, 0], sizes = [1, 128], strides = [1, 1]} : vector<1x384xf32> to vector<1x128xf32>
    %175 = vector.extract_strided_slice %173 {offsets = [0, 0], sizes = [1, 128], strides = [1, 1]} : vector<1x384xf32> to vector<1x128xf32>
    %176 = arith.addf %174, %175 : vector<1x128xf32>
    %177 = arith.negf %176 : vector<1x128xf32>
    %178 = math.exp %177 : vector<1x128xf32>
    %cst_60 = arith.constant 1.000000e+00 : f32
    %179 = vector.broadcast %cst_60 : f32 to vector<1x128xf32>
    %180 = arith.addf %179, %178 : vector<1x128xf32>
    %181 = arith.divf %179, %180 : vector<1x128xf32>
    %182 = vector.extract_strided_slice %171 {offsets = [0, 128], sizes = [1, 128], strides = [1, 1]} : vector<1x384xf32> to vector<1x128xf32>
    %183 = vector.extract_strided_slice %173 {offsets = [0, 128], sizes = [1, 128], strides = [1, 1]} : vector<1x384xf32> to vector<1x128xf32>
    %184 = arith.addf %182, %183 : vector<1x128xf32>
    %185 = arith.negf %184 : vector<1x128xf32>
    %186 = math.exp %185 : vector<1x128xf32>
    %cst_61 = arith.constant 1.000000e+00 : f32
    %187 = vector.broadcast %cst_61 : f32 to vector<1x128xf32>
    %188 = arith.addf %187, %186 : vector<1x128xf32>
    %189 = arith.divf %187, %188 : vector<1x128xf32>
    %190 = vector.extract_strided_slice %171 {offsets = [0, 256], sizes = [1, 128], strides = [1, 1]} : vector<1x384xf32> to vector<1x128xf32>
    %191 = vector.extract_strided_slice %173 {offsets = [0, 256], sizes = [1, 128], strides = [1, 1]} : vector<1x384xf32> to vector<1x128xf32>
    %192 = arith.mulf %181, %191 : vector<1x128xf32>
    %193 = arith.addf %190, %192 : vector<1x128xf32>
    %194 = math.tanh %193 : vector<1x128xf32>
    %cst_62 = arith.constant 1.000000e+00 : f32
    %195 = vector.broadcast %cst_62 : f32 to vector<1x128xf32>
    %196 = arith.subf %195, %189 : vector<1x128xf32>
    %197 = arith.mulf %196, %194 : vector<1x128xf32>
    %198 = arith.mulf %189, %167 : vector<1x128xf32>
    %199 = arith.addf %197, %198 : vector<1x128xf32>
    %200 = arith.index_cast %c3_i32_57 : i32 to index
    %c0_63 = arith.constant 0 : index
    %201 = vector.load %arg12[%200, %c0_63] : memref<8x128xf32, #tpu.memory_space<vmem>>, vector<1x128xf32>
    tpu.vector_store %arg12[%200, %c0_63], %199 {strides = array<i32>} : memref<8x128xf32, #tpu.memory_space<vmem>>, vector<1x128xf32>,
    %c4_i32_64 = arith.constant 4 : i32
    %202 = arith.index_cast %c4_i32_64 : i32 to index
    %c0_65 = arith.constant 0 : index
    %203 = vector.load %arg11[%202, %c0_65] : memref<8x384xf32, #tpu.memory_space<vmem>>, vector<1x384xf32>
    %cst_66 = arith.constant dense<0.000000e+00> : vector<1x384xf32>
    %204 = tpu.matmul %199, %71, %cst_66 {dimension_numbers = #tpu.dot_dimension_numbers<[1], [0], [0], [1], [0, 0, 1, 1], [], []>} : vector<1x128xf32>, vector<128x384xf32>, vector<1x384xf32> -> vector<1x384xf32>
    %205 = arith.addf %204, %72 : vector<1x384xf32>
    %206 = vector.extract_strided_slice %203 {offsets = [0, 0], sizes = [1, 128], strides = [1, 1]} : vector<1x384xf32> to vector<1x128xf32>
    %207 = vector.extract_strided_slice %205 {offsets = [0, 0], sizes = [1, 128], strides = [1, 1]} : vector<1x384xf32> to vector<1x128xf32>
    %208 = arith.addf %206, %207 : vector<1x128xf32>
    %209 = arith.negf %208 : vector<1x128xf32>
    %210 = math.exp %209 : vector<1x128xf32>
    %cst_67 = arith.constant 1.000000e+00 : f32
    %211 = vector.broadcast %cst_67 : f32 to vector<1x128xf32>
    %212 = arith.addf %211, %210 : vector<1x128xf32>
    %213 = arith.divf %211, %212 : vector<1x128xf32>
    %214 = vector.extract_strided_slice %203 {offsets = [0, 128], sizes = [1, 128], strides = [1, 1]} : vector<1x384xf32> to vector<1x128xf32>
    %215 = vector.extract_strided_slice %205 {offsets = [0, 128], sizes = [1, 128], strides = [1, 1]} : vector<1x384xf32> to vector<1x128xf32>
    %216 = arith.addf %214, %215 : vector<1x128xf32>
    %217 = arith.negf %216 : vector<1x128xf32>
    %218 = math.exp %217 : vector<1x128xf32>
    %cst_68 = arith.constant 1.000000e+00 : f32
    %219 = vector.broadcast %cst_68 : f32 to vector<1x128xf32>
    %220 = arith.addf %219, %218 : vector<1x128xf32>
    %221 = arith.divf %219, %220 : vector<1x128xf32>
    %222 = vector.extract_strided_slice %203 {offsets = [0, 256], sizes = [1, 128], strides = [1, 1]} : vector<1x384xf32> to vector<1x128xf32>
    %223 = vector.extract_strided_slice %205 {offsets = [0, 256], sizes = [1, 128], strides = [1, 1]} : vector<1x384xf32> to vector<1x128xf32>
    %224 = arith.mulf %213, %223 : vector<1x128xf32>
    %225 = arith.addf %222, %224 : vector<1x128xf32>
    %226 = math.tanh %225 : vector<1x128xf32>
    %cst_69 = arith.constant 1.000000e+00 : f32
    %227 = vector.broadcast %cst_69 : f32 to vector<1x128xf32>
    %228 = arith.subf %227, %221 : vector<1x128xf32>
    %229 = arith.mulf %228, %226 : vector<1x128xf32>
    %230 = arith.mulf %221, %199 : vector<1x128xf32>
    %231 = arith.addf %229, %230 : vector<1x128xf32>
    %232 = arith.index_cast %c4_i32_64 : i32 to index
    %c0_70 = arith.constant 0 : index
    %233 = vector.load %arg12[%232, %c0_70] : memref<8x128xf32, #tpu.memory_space<vmem>>, vector<1x128xf32>
    tpu.vector_store %arg12[%232, %c0_70], %231 {strides = array<i32>} : memref<8x128xf32, #tpu.memory_space<vmem>>, vector<1x128xf32>,
    %c5_i32_71 = arith.constant 5 : i32
    %234 = arith.index_cast %c5_i32_71 : i32 to index
    %c0_72 = arith.constant 0 : index
    %235 = vector.load %arg11[%234, %c0_72] : memref<8x384xf32, #tpu.memory_space<vmem>>, vector<1x384xf32>
    %cst_73 = arith.constant dense<0.000000e+00> : vector<1x384xf32>
    %236 = tpu.matmul %231, %71, %cst_73 {dimension_numbers = #tpu.dot_dimension_numbers<[1], [0], [0], [1], [0, 0, 1, 1], [], []>} : vector<1x128xf32>, vector<128x384xf32>, vector<1x384xf32> -> vector<1x384xf32>
    %237 = arith.addf %236, %72 : vector<1x384xf32>
    %238 = vector.extract_strided_slice %235 {offsets = [0, 0], sizes = [1, 128], strides = [1, 1]} : vector<1x384xf32> to vector<1x128xf32>
    %239 = vector.extract_strided_slice %237 {offsets = [0, 0], sizes = [1, 128], strides = [1, 1]} : vector<1x384xf32> to vector<1x128xf32>
    %240 = arith.addf %238, %239 : vector<1x128xf32>
    %241 = arith.negf %240 : vector<1x128xf32>
    %242 = math.exp %241 : vector<1x128xf32>
    %cst_74 = arith.constant 1.000000e+00 : f32
    %243 = vector.broadcast %cst_74 : f32 to vector<1x128xf32>
    %244 = arith.addf %243, %242 : vector<1x128xf32>
    %245 = arith.divf %243, %244 : vector<1x128xf32>
    %246 = vector.extract_strided_slice %235 {offsets = [0, 128], sizes = [1, 128], strides = [1, 1]} : vector<1x384xf32> to vector<1x128xf32>
    %247 = vector.extract_strided_slice %237 {offsets = [0, 128], sizes = [1, 128], strides = [1, 1]} : vector<1x384xf32> to vector<1x128xf32>
    %248 = arith.addf %246, %247 : vector<1x128xf32>
    %249 = arith.negf %248 : vector<1x128xf32>
    %250 = math.exp %249 : vector<1x128xf32>
    %cst_75 = arith.constant 1.000000e+00 : f32
    %251 = vector.broadcast %cst_75 : f32 to vector<1x128xf32>
    %252 = arith.addf %251, %250 : vector<1x128xf32>
    %253 = arith.divf %251, %252 : vector<1x128xf32>
    %254 = vector.extract_strided_slice %235 {offsets = [0, 256], sizes = [1, 128], strides = [1, 1]} : vector<1x384xf32> to vector<1x128xf32>
    %255 = vector.extract_strided_slice %237 {offsets = [0, 256], sizes = [1, 128], strides = [1, 1]} : vector<1x384xf32> to vector<1x128xf32>
    %256 = arith.mulf %245, %255 : vector<1x128xf32>
    %257 = arith.addf %254, %256 : vector<1x128xf32>
    %258 = math.tanh %257 : vector<1x128xf32>
    %cst_76 = arith.constant 1.000000e+00 : f32
    %259 = vector.broadcast %cst_76 : f32 to vector<1x128xf32>
    %260 = arith.subf %259, %253 : vector<1x128xf32>
    %261 = arith.mulf %260, %258 : vector<1x128xf32>
    %262 = arith.mulf %253, %231 : vector<1x128xf32>
    %263 = arith.addf %261, %262 : vector<1x128xf32>
    %264 = arith.index_cast %c5_i32_71 : i32 to index
    %c0_77 = arith.constant 0 : index
    %265 = vector.load %arg12[%264, %c0_77] : memref<8x128xf32, #tpu.memory_space<vmem>>, vector<1x128xf32>
    tpu.vector_store %arg12[%264, %c0_77], %263 {strides = array<i32>} : memref<8x128xf32, #tpu.memory_space<vmem>>, vector<1x128xf32>,
    %c6_i32_78 = arith.constant 6 : i32
    %266 = arith.index_cast %c6_i32_78 : i32 to index
    %c0_79 = arith.constant 0 : index
    %267 = vector.load %arg11[%266, %c0_79] : memref<8x384xf32, #tpu.memory_space<vmem>>, vector<1x384xf32>
    %cst_80 = arith.constant dense<0.000000e+00> : vector<1x384xf32>
    %268 = tpu.matmul %263, %71, %cst_80 {dimension_numbers = #tpu.dot_dimension_numbers<[1], [0], [0], [1], [0, 0, 1, 1], [], []>} : vector<1x128xf32>, vector<128x384xf32>, vector<1x384xf32> -> vector<1x384xf32>
    %269 = arith.addf %268, %72 : vector<1x384xf32>
    %270 = vector.extract_strided_slice %267 {offsets = [0, 0], sizes = [1, 128], strides = [1, 1]} : vector<1x384xf32> to vector<1x128xf32>
    %271 = vector.extract_strided_slice %269 {offsets = [0, 0], sizes = [1, 128], strides = [1, 1]} : vector<1x384xf32> to vector<1x128xf32>
    %272 = arith.addf %270, %271 : vector<1x128xf32>
    %273 = arith.negf %272 : vector<1x128xf32>
    %274 = math.exp %273 : vector<1x128xf32>
    %cst_81 = arith.constant 1.000000e+00 : f32
    %275 = vector.broadcast %cst_81 : f32 to vector<1x128xf32>
    %276 = arith.addf %275, %274 : vector<1x128xf32>
    %277 = arith.divf %275, %276 : vector<1x128xf32>
    %278 = vector.extract_strided_slice %267 {offsets = [0, 128], sizes = [1, 128], strides = [1, 1]} : vector<1x384xf32> to vector<1x128xf32>
    %279 = vector.extract_strided_slice %269 {offsets = [0, 128], sizes = [1, 128], strides = [1, 1]} : vector<1x384xf32> to vector<1x128xf32>
    %280 = arith.addf %278, %279 : vector<1x128xf32>
    %281 = arith.negf %280 : vector<1x128xf32>
    %282 = math.exp %281 : vector<1x128xf32>
    %cst_82 = arith.constant 1.000000e+00 : f32
    %283 = vector.broadcast %cst_82 : f32 to vector<1x128xf32>
    %284 = arith.addf %283, %282 : vector<1x128xf32>
    %285 = arith.divf %283, %284 : vector<1x128xf32>
    %286 = vector.extract_strided_slice %267 {offsets = [0, 256], sizes = [1, 128], strides = [1, 1]} : vector<1x384xf32> to vector<1x128xf32>
    %287 = vector.extract_strided_slice %269 {offsets = [0, 256], sizes = [1, 128], strides = [1, 1]} : vector<1x384xf32> to vector<1x128xf32>
    %288 = arith.mulf %277, %287 : vector<1x128xf32>
    %289 = arith.addf %286, %288 : vector<1x128xf32>
    %290 = math.tanh %289 : vector<1x128xf32>
    %cst_83 = arith.constant 1.000000e+00 : f32
    %291 = vector.broadcast %cst_83 : f32 to vector<1x128xf32>
    %292 = arith.subf %291, %285 : vector<1x128xf32>
    %293 = arith.mulf %292, %290 : vector<1x128xf32>
    %294 = arith.mulf %285, %263 : vector<1x128xf32>
    %295 = arith.addf %293, %294 : vector<1x128xf32>
    %296 = arith.index_cast %c6_i32_78 : i32 to index
    %c0_84 = arith.constant 0 : index
    %297 = vector.load %arg12[%296, %c0_84] : memref<8x128xf32, #tpu.memory_space<vmem>>, vector<1x128xf32>
    tpu.vector_store %arg12[%296, %c0_84], %295 {strides = array<i32>} : memref<8x128xf32, #tpu.memory_space<vmem>>, vector<1x128xf32>,
    %c7_i32_85 = arith.constant 7 : i32
    %298 = arith.index_cast %c7_i32_85 : i32 to index
    %c0_86 = arith.constant 0 : index
    %299 = vector.load %arg11[%298, %c0_86] : memref<8x384xf32, #tpu.memory_space<vmem>>, vector<1x384xf32>
    %cst_87 = arith.constant dense<0.000000e+00> : vector<1x384xf32>
    %300 = tpu.matmul %295, %71, %cst_87 {dimension_numbers = #tpu.dot_dimension_numbers<[1], [0], [0], [1], [0, 0, 1, 1], [], []>} : vector<1x128xf32>, vector<128x384xf32>, vector<1x384xf32> -> vector<1x384xf32>
    %301 = arith.addf %300, %72 : vector<1x384xf32>
    %302 = vector.extract_strided_slice %299 {offsets = [0, 0], sizes = [1, 128], strides = [1, 1]} : vector<1x384xf32> to vector<1x128xf32>
    %303 = vector.extract_strided_slice %301 {offsets = [0, 0], sizes = [1, 128], strides = [1, 1]} : vector<1x384xf32> to vector<1x128xf32>
    %304 = arith.addf %302, %303 : vector<1x128xf32>
    %305 = arith.negf %304 : vector<1x128xf32>
    %306 = math.exp %305 : vector<1x128xf32>
    %cst_88 = arith.constant 1.000000e+00 : f32
    %307 = vector.broadcast %cst_88 : f32 to vector<1x128xf32>
    %308 = arith.addf %307, %306 : vector<1x128xf32>
    %309 = arith.divf %307, %308 : vector<1x128xf32>
    %310 = vector.extract_strided_slice %299 {offsets = [0, 128], sizes = [1, 128], strides = [1, 1]} : vector<1x384xf32> to vector<1x128xf32>
    %311 = vector.extract_strided_slice %301 {offsets = [0, 128], sizes = [1, 128], strides = [1, 1]} : vector<1x384xf32> to vector<1x128xf32>
    %312 = arith.addf %310, %311 : vector<1x128xf32>
    %313 = arith.negf %312 : vector<1x128xf32>
    %314 = math.exp %313 : vector<1x128xf32>
    %cst_89 = arith.constant 1.000000e+00 : f32
    %315 = vector.broadcast %cst_89 : f32 to vector<1x128xf32>
    %316 = arith.addf %315, %314 : vector<1x128xf32>
    %317 = arith.divf %315, %316 : vector<1x128xf32>
    %318 = vector.extract_strided_slice %299 {offsets = [0, 256], sizes = [1, 128], strides = [1, 1]} : vector<1x384xf32> to vector<1x128xf32>
    %319 = vector.extract_strided_slice %301 {offsets = [0, 256], sizes = [1, 128], strides = [1, 1]} : vector<1x384xf32> to vector<1x128xf32>
    %320 = arith.mulf %309, %319 : vector<1x128xf32>
    %321 = arith.addf %318, %320 : vector<1x128xf32>
    %322 = math.tanh %321 : vector<1x128xf32>
    %cst_90 = arith.constant 1.000000e+00 : f32
    %323 = vector.broadcast %cst_90 : f32 to vector<1x128xf32>
    %324 = arith.subf %323, %317 : vector<1x128xf32>
    %325 = arith.mulf %324, %322 : vector<1x128xf32>
    %326 = arith.mulf %317, %295 : vector<1x128xf32>
    %327 = arith.addf %325, %326 : vector<1x128xf32>
    %328 = arith.index_cast %c7_i32_85 : i32 to index
    %c0_91 = arith.constant 0 : index
    %329 = vector.load %arg12[%328, %c0_91] : memref<8x128xf32, #tpu.memory_space<vmem>>, vector<1x128xf32>
    tpu.vector_store %arg12[%328, %c0_91], %327 {strides = array<i32>} : memref<8x128xf32, #tpu.memory_space<vmem>>, vector<1x128xf32>,
    %c8_i32_92 = arith.constant 8 : i32
    %c0_93 = arith.constant 0 : index
    %c0_94 = arith.constant 0 : index
    %330 = vector.load %arg9[%c0_93, %c0_94] : memref<1x128xf32, #tpu.memory_space<vmem>>, vector<1x128xf32>
    tpu.vector_store %arg9[%c0_93, %c0_94], %327 {strides = array<i32>} : memref<1x128xf32, #tpu.memory_space<vmem>>, vector<1x128xf32>,
    %c0_95 = arith.constant 0 : index
    %c0_96 = arith.constant 0 : index
    %331 = vector.load %arg12[%c0_95, %c0_96] : memref<8x128xf32, #tpu.memory_space<vmem>>, vector<8x128xf32>
    %c0_97 = arith.constant 0 : index
    %c0_98 = arith.constant 0 : index
    %332 = vector.load %arg5[%c0_97, %c0_98] : memref<128x128xf32, #tpu.memory_space<vmem>>, vector<128x128xf32>
    %cst_99 = arith.constant dense<0.000000e+00> : vector<8x128xf32>
    %333 = tpu.matmul %331, %332, %cst_99 {dimension_numbers = #tpu.dot_dimension_numbers<[1], [0], [0], [1], [0, 0, 1, 1], [], []>} : vector<8x128xf32>, vector<128x128xf32>, vector<8x128xf32> -> vector<8x128xf32>
    %c0_100 = arith.constant 0 : index
    %c0_101 = arith.constant 0 : index
    %334 = vector.load %arg6[%c0_100, %c0_101] : memref<1x128xf32, #tpu.memory_space<vmem>>, vector<1x128xf32>
    %335 = vector.broadcast %334 : vector<1x128xf32> to vector<8x128xf32>
    %336 = arith.addf %333, %335 : vector<8x128xf32>
    %cst_102 = arith.constant dense<0xFF800000> : vector<8xf32>
    %337 = vector.multi_reduction <maximumf>, %336, %cst_102 [1] : vector<8x128xf32> to vector<8xf32>
    %338 = vector.shape_cast %337 : vector<8xf32> to vector<8x1xf32>
    %339 = vector.broadcast %338 : vector<8x1xf32> to vector<8x128xf32>
    %340 = arith.subf %336, %339 : vector<8x128xf32>
    %341 = math.exp %340 : vector<8x128xf32>
    %cst_103 = arith.constant dense<0.000000e+00> : vector<8xf32>
    %342 = vector.multi_reduction <add>, %341, %cst_103 [1] : vector<8x128xf32> to vector<8xf32>
    %343 = vector.shape_cast %342 : vector<8xf32> to vector<8x1xf32>
    %344 = math.log %343 : vector<8x1xf32>
    %345 = arith.addf %338, %344 : vector<8x1xf32>
    %346 = vector.broadcast %345 : vector<8x1xf32> to vector<8x128xf32>
    %347 = arith.subf %336, %346 : vector<8x128xf32>
    %c0_104 = arith.constant 0 : index
    %c0_105 = arith.constant 0 : index
    %348 = vector.load %arg8[%c0_104, %c0_105] : memref<8x128xf32, #tpu.memory_space<vmem>>, vector<8x128xf32>
    tpu.vector_store %arg8[%c0_104, %c0_105], %347 {strides = array<i32>} : memref<8x128xf32, #tpu.memory_space<vmem>>, vector<8x128xf32>,
    return
  }
}

</mosaic_0001>

<bundles_post_ra>
// kernel: tpu_custom_call.1
= control target key start
LH: loop header
LB: loop body
LE: loop exit
PB: predicated region body
PF: predicated region fallthrough
CT: control target
= control target key end

     0   :  { %15 = vsyncpa [#allocation8], 0  ;;  %s2447_s0 = inlined_call_operand.hbm [shape: s32[8], index: 0, kind: input, shape index: {}]   ;;  %s2448_s1 = inlined_call_operand.hbm [shape: f32[64,128], index: 1, kind: input, shape index: {}]   ;;  %s2449_s2 = inlined_call_operand.hbm [shape: f32[128,384], index: 2, kind: input, shape index: {}]   ;;  %s2450_s3 = inlined_call_operand.hbm [shape: f32[128,384], index: 3, kind: input, shape index: {}]   ;;  %s2451_s4 = inlined_call_operand.hbm [shape: f32[2,384], index: 4, kind: input, shape index: {}]   ;;  %s2452_s5 = inlined_call_operand.hbm [shape: f32[128,128], index: 5, kind: input, shape index: {}]   ;;  %s2453_s6 = inlined_call_operand.vmem [shape: f32[1,128], index: 6, kind: input, shape index: {}]   ;;  %s2454_s7 = inlined_call_operand.vmem [shape: f32[1,128], index: 7, kind: input, shape index: {}]   ;;  %s2455_s8 = inlined_call_operand.hbm [shape: f32[8,128], index: 8, kind: output, shape index: {0}]   ;;  %s2456_s9 = inlined_call_operand.hbm [shape: f32[1,128], index: 9, kind: output, shape index: {1}]  }
   0x1   :  { %16 = vsyncpa [#allocation6], 0 }
   0x2   :  { %17 = vsyncpa [#allocation11], 0 }
   0x3   :  { %18 = vsyncpa [#allocation14], 0 }
   0x4   :  { %19 = vsyncpa [#allocation7], 0  ;;  %s47_s11 = sshll.u32 %s2449_s2, 4  ;;  %s48_s11 = int_to_ptr.hbm [resolvable:$true] %s47_s11 }
   0x5   :  { %20 = vsyncpa [#allocation18], 0  ;;  %s1717_s12 = smov [#allocation10]   ;;  %s74_s16 = sshll.u32 %s2451_s4, 4  ;;  %s75_s16 = int_to_ptr.hbm [resolvable:$true] %s74_s16 }
   0x6   :  { %s49_s13 = sshll.u32 %s1717_s12, 4  ;;  %s1718_s17 = smov 384   ;;  %s50_s13 = int_to_ptr.vmem [resolvable:$true] %s49_s13 }
   0x7   :  { %s1719_s18 = smov 24   ;;  %s1720_s19 = smov [#allocation13]  }
   0x8   :  { %55 = dma.hbm_to_vmem [thread:$0]  %s48_s11, 6144, %s50_s13, [#allocation11], %s1718_s17, %s1718_s17, %s1719_s18  }
   0x9   :  { %s76_s20 = sshll.u32 %s1720_s19, 4  ;;  %s26_s23 = sshll.u32 %s2447_s0, 4  ;;  %s77_s20 = int_to_ptr.vmem [resolvable:$true] %s76_s20  ;;  %s27_s23 = int_to_ptr.hbm [resolvable:$true] %s26_s23 }
   0xa   :  { %79 = dma.hbm_to_vmem [thread:$0]  %s75_s16, 96, %s77_s20, [#allocation14]  }
   0xb   :  { %s34_s25 = sshll.u32 %s2448_s1, 4  ;;  %s1721_s26 = smov [#allocation5]   ;;  %s35_s25 = int_to_ptr.hbm [resolvable:$true] %s34_s25 }
   0xc   :  { %29 = dma.hbm_to_smem %s27_s23, 16, %s1721_s26, [#allocation8]  }
   0xd   :  { %s1722_s4 = smov [#allocation9]   ;;  %s1723_s28 = smov 128  }
   0xe   :  { %s36_s27 = sshll.u32 %s1722_s4, 4  ;;  %s1724_s29 = smov 8   ;;  %s37_s27 = int_to_ptr.vmem [resolvable:$true] %s36_s27 }
   0xf   :  { %42 = dma.hbm_to_vmem [thread:$0]  %s35_s25, 1024, %s37_s27, [#allocation6], %s1723_s28, %s1723_s28, %s1724_s29  }
  0x10   :  { %s60_s0 = sshll.u32 %s2450_s3, 4  ;;  %s1725_s11 = smov [#allocation12]   ;;  %s61_s0 = int_to_ptr.hbm [resolvable:$true] %s60_s0 }
  0x11   :  { %s62_s12 = sshll.u32 %s1725_s11, 4  ;;  %s84_s1 = sshll.u32 %s2452_s5, 4  ;;  %s63_s12 = int_to_ptr.vmem [resolvable:$true] %s62_s12  ;;  %s85_s1 = int_to_ptr.hbm [resolvable:$true] %s84_s1 }
  0x12   :  { %68 = dma.hbm_to_vmem [thread:$0]  %s61_s0, 6144, %s63_s12, [#allocation11], %s1718_s17, %s1718_s17, %s1719_s18  }
  0x13   :  { %s1726_s15 = smov [#allocation15]  }
  0x14   :  { %s86_s16 = sshll.u32 %s1726_s15, 4  ;;  %s87_s16 = int_to_ptr.vmem [resolvable:$true] %s86_s16 }
  0x15   :  { %92 = dma.hbm_to_vmem [thread:$0]  %s85_s1, 2048, %s87_s16, [#allocation14], %s1723_s28, %s1723_s28, %s1724_s29  }
  0x16   :  { %1705 = dma.done.wait [#allocation8], 16  }
  0x17   :  { %1706 = vsyncadd [#allocation8], 4294967280 }
  0x18   :  { %1707 = dma.done.wait [#allocation6], 1024  }
  0x19   :  { %1708 = vsyncadd [#allocation6], 4294966272 }
  0x1a   :  { %1709 = dma.done.wait [#allocation11], 12288  }
  0x1b   :  { %1710 = vsyncadd [#allocation11], 4294955008 }
  0x1c   :  { %1711 = dma.done.wait [#allocation14], 2144  }
  0x1d   :  { %1712 = vsyncadd [#allocation14], 4294965152 }
  0x1e   :  { %121 = sfence }
  0x1f   :  { %v208_v0 = vld [vmem:[#allocation10 + $0x168] sm:$0xff]  ;;  %v210_v1 = vld [vmem:[#allocation10 + $0x178] sm:$0xff]  ;;  %v205_v2 = vld [vmem:[#allocation10 + $0x150] sm:$0xff]  ;;  %s1797_s3 = sld [smem:[#allocation5]]  ;;  %s1727_s0 = smov [#allocation17]  }
  0x20   :  { %219 = vmatpush.msra.mxu0 %v208_v0  ;;  %259 = vmatpush.msra.mxu2 %v210_v1  ;;  %v207_v3 = vld [vmem:[#allocation10 + $0x160] sm:$0xff]  ;;  %v202_v4 = vld [vmem:[#allocation10 + $0x138] sm:$0xff]  ;;  %v204_v5 = vld [vmem:[#allocation10 + $0x148] sm:$0xff]  ;;  %s1801_s5 = sld [smem:[#allocation5 + $0x1]]  ;;  %s1329_s11 = sshll.u32 %s1727_s0, 4  ;;  %s1330_s11 = int_to_ptr.vmem [resolvable:$true] %s1329_s11 }
  0x21   :  { %v209_v6 = vld [vmem:[#allocation10 + $0x170] sm:$0xff]  ;;  %v206_v7 = vld [vmem:[#allocation10 + $0x158] sm:$0xff]  ;;  %v199_v8 = vld [vmem:[#allocation10 + $0x120] sm:$0xff]  ;;  %s1805_s17 = sld [smem:[#allocation5 + $0x2]]  ;;  %s1331_s14 = sshll.u32 %s2456_s9, 4  ;;  %s1332_s14 = int_to_ptr.hbm [resolvable:$true] %s1331_s14 }
  0x22   :  { %220 = vmatpush.msra.mxu0 %v205_v2  ;;  %260 = vmatpush.msra.mxu2 %v207_v3  ;;  %v201_v9 = vld [vmem:[#allocation10 + $0x130] sm:$0xff]  ;;  %v1799_v10 = vld [vmem:[#allocation12 + $0x168] sm:$0xff]  ;;  %v203_v11 = vld [vmem:[#allocation10 + $0x140] sm:$0xff]  ;;  %s1808_s18 = sld [smem:[#allocation5 + $0x3]] }
  0x23   :  { %239 = vmatpush.msra.mxu1 %v209_v6  ;;  %v1803_v12 = vld [vmem:[#allocation12 + $0x150] sm:$0xff]  ;;  %v196_v13 = vld [vmem:[#allocation10 + $0x108] sm:$0xff]  ;;  %v198_v14 = vld [vmem:[#allocation10 + $0x118] sm:$0xff]  ;;  %341 = vmatpush.msra.mxu3 %v1799_v10  ;;  %s1812_s19 = sld [smem:[#allocation5 + $0x4]] }
  0x24   :  { %221 = vmatpush.msra.mxu0 %v202_v4  ;;  %261 = vmatpush.msra.mxu2 %v204_v5  ;;  %v200_v15 = vld [vmem:[#allocation10 + $0x128] sm:$0xff]  ;;  %v1810_v16 = vld [vmem:[#allocation12 + $0x138] sm:$0xff]  ;;  %v193_v17 = vld [vmem:[#allocation10 + $0xf0] sm:$0xff]  ;;  %s1815_s20 = sld [smem:[#allocation5 + $0x5]] }
  0x25   :  { %240 = vmatpush.msra.mxu1 %v206_v7  ;;  %v195_v18 = vld [vmem:[#allocation10 + $0x100] sm:$0xff]  ;;  %342 = vmatpush.msra.mxu3 %v1803_v12  ;;  %v197_v19 = vld [vmem:[#allocation10 + $0x110] sm:$0xff]  ;;  %s1819_s21 = sld [smem:[#allocation5 + $0x6]]  ;;  %v190_v21 = vld [vmem:[#allocation10 + $0xd8] sm:$0xff]  ;;  %s123_s23 = scalar_lea.vmem [#allocation9], %s1797_s3 }
  0x26   :  { %222 = vmatpush.msra.mxu0 %v199_v8  ;;  %262 = vmatpush.msra.mxu2 %v201_v9  ;;  %v1817_v20 = vld [vmem:[#allocation12 + $0x120] sm:$0xff]  ;;  %v192_v22 = vld [vmem:[#allocation10 + $0xe8] sm:$0xff]  ;;  %s1822_s22 = sld [smem:[#allocation5 + $0x7]]  ;;  %v194_v23 = vld [vmem:[#allocation10 + $0xf8] sm:$0xff]  ;;  %s128_s2 = scalar_lea.vmem [#allocation9], %s1801_s5 }
  0x27   :  { %241 = vmatpush.msra.mxu1 %v203_v11  ;;  %343 = vmatpush.msra.mxu3 %v1810_v16  ;;  %v1824_v24 = vld [vmem:[#allocation12 + $0x108] sm:$0xff]  ;;  %v187_v25 = vld [vmem:[#allocation10 + $0xc0] sm:$0xff]  ;;  %v189_v26 = vld [vmem:[#allocation10 + $0xd0] sm:$0xff]  ;;  %s133_s24 = scalar_lea.vmem [#allocation9], %s1805_s17  ;;  %s1320_s3 = sshll.u32 %s2455_s8, 4  ;;  %s1321_s3 = int_to_ptr.hbm [resolvable:$true] %s1320_s3 }
  0x28   :  { %223 = vmatpush.msra.mxu0 %v196_v13  ;;  %263 = vmatpush.msra.mxu2 %v198_v14  ;;  %v191_v27 = vld [vmem:[#allocation10 + $0xe0] sm:$0xff]  ;;  %v1827_v28 = vld [vmem:[#allocation12 + $0xf0] sm:$0xff]  ;;  %v184_v29 = vld [vmem:[#allocation10 + $0xa8] sm:$0xff]  ;;  %s138_s25 = scalar_lea.vmem [#allocation9], %s1808_s18 }
  0x29   :  { %242 = vmatpush.msra.mxu1 %v200_v15  ;;  %344 = vmatpush.msra.mxu3 %v1817_v20  ;;  %v186_v30 = vld [vmem:[#allocation10 + $0xb8] sm:$0xff]  ;;  %v188_v31 = vld [vmem:[#allocation10 + $0xc8] sm:$0xff]  ;;  %v181_v33 = vld [vmem:[#allocation10 + $0x90] sm:$0xff]  ;;  %s143_s26 = scalar_lea.vmem [#allocation9], %s1812_s19 }
  0x2a   :  { %224 = vmatpush.msra.mxu0 %v193_v17  ;;  %264 = vmatpush.msra.mxu2 %v195_v18  ;;  %v1830_v32 = vld [vmem:[#allocation12 + $0xd8] sm:$0xff]  ;;  %v183_v34 = vld [vmem:[#allocation10 + $0xa0] sm:$0xff]  ;;  %v180_v36 = vld [vmem:[#allocation10 + $0x88] sm:$0xff]  ;;  %s148_s4 = scalar_lea.vmem [#allocation9], %s1815_s20 }
  0x2b   :  { %243 = vmatpush.msra.mxu1 %v197_v19  ;;  %345 = vmatpush.msra.mxu3 %v1824_v24  ;;  %v178_v35 = vld [vmem:[#allocation10 + $0x78] sm:$0xff]  ;;  %v185_v37 = vld [vmem:[#allocation10 + $0xb0] sm:$0xff]  ;;  %v1833_v38 = vld [vmem:[#allocation12 + $0xc0] sm:$0xff]  ;;  %s153_s27 = scalar_lea.vmem [#allocation9], %s1819_s21 }
  0x2c   :  { %225 = vmatpush.msra.mxu0 %v190_v21  ;;  %265 = vmatpush.msra.mxu2 %v192_v22  ;;  %v175_v39 = vld [vmem:[#allocation10 + $0x60] sm:$0xff]  ;;  %v177_v40 = vld [vmem:[#allocation10 + $0x70] sm:$0xff]  ;;  %v182_v41 = vld [vmem:[#allocation10 + $0x98] sm:$0xff]  ;;  %s158_s28 = scalar_lea.vmem [#allocation9], %s1822_s22 }
  0x2d   :  { %244 = vmatpush.msra.mxu1 %v194_v23  ;;  %346 = vmatpush.msra.mxu3 %v1827_v28  ;;  %v1836_v42 = vld [vmem:[#allocation12 + $0xa8] sm:$0xff]  ;;  %v124_v43 = vld [vmem:[%s123_s23] sm:$0x1]  ;;  %v179_v48 = vld [vmem:[#allocation10 + $0x80] sm:$0xff] }
  0x2e   :  { %226 = vmatpush.msra.mxu0 %v187_v25  ;;  %266 = vmatpush.msra.mxu2 %v189_v26  ;;  %v129_v44 = vld [vmem:[%s128_s2] sm:$0x1]  ;;  %v172_v46 = vld [vmem:[#allocation10 + $0x48] sm:$0xff]  ;;  %v125_v49 = vmax.f32 %v124_v43, 0.0  ;;  %v1843_v53 = vld [vmem:[#allocation12 + $0x90] sm:$0xff] }
  0x2f   :  { %245 = vmatpush.msra.mxu1 %v191_v27  ;;  %347 = vmatpush.msra.mxu3 %v1830_v32  ;;  %v134_v45 = vld [vmem:[%s133_s24] sm:$0x1]  ;;  %v130_v50 = vmax.f32 %v129_v44, 0.0  ;;  %v176_v57 = vld [vmem:[#allocation10 + $0x68] sm:$0xff]  ;;  %v169_v63 = vld [vmem:[#allocation10 + $0x30] sm:$0xff] }
  0x30   :  { %227 = vmatpush.msra.mxu0 %v184_v29  ;;  %267 = vmatpush.msra.mxu2 %v186_v30  ;;  %v174_v47 = vld [vmem:[#allocation10 + $0x58] sm:$0xff]  ;;  %v135_v51 = vmax.f32 %v134_v45, 0.0  ;;  %126 = vst [vmem:[#allocation2] sm:$0x1] %v125_v49  ;;  %v171_v0 = vld [vmem:[#allocation10 + $0x40] sm:$0xff]  ;;  %v173_v2 = vld [vmem:[#allocation10 + $0x50] sm:$0xff] }
  0x31   :  { %246 = vmatpush.msra.mxu1 %v188_v31  ;;  %348 = vmatpush.msra.mxu3 %v1833_v38  ;;  %v139_v52 = vld [vmem:[%s138_s25] sm:$0x1]  ;;  %131 = vst [vmem:[#allocation2 + $0x1] sm:$0x1] %v130_v50  ;;  %v1853_v3 = vld [vmem:[#allocation12 + $0x60] sm:$0xff]  ;;  %v168_v6 = vld [vmem:[#allocation10 + $0x28] sm:$0xff] }
  0x32   :  { %228 = vmatpush.msra.mxu0 %v181_v33  ;;  %268 = vmatpush.msra.mxu2 %v183_v34  ;;  %v140_v54 = vmax.f32 %v139_v52, 0.0  ;;  %v144_v55 = vld [vmem:[%s143_s26] sm:$0x1]  ;;  %136 = vst [vmem:[#allocation2 + $0x2] sm:$0x1] %v135_v51  ;;  %v1856_v8 = vld [vmem:[#allocation12 + $0x48] sm:$0xff] }
  0x33   :  { %247 = vmatpush.msra.mxu1 %v185_v37  ;;  %v149_v56 = vld [vmem:[%s148_s4] sm:$0x1]  ;;  %349 = vmatpush.msra.mxu3 %v1836_v42  ;;  %v145_v58 = vmax.f32 %v144_v55, 0.0  ;;  %v163_v9 = vld [vmem:[#allocation10] sm:$0xff]  ;;  %v165_v11 = vld [vmem:[#allocation10 + $0x10] sm:$0xff] }
  0x34   :  { %229 = vmatpush.msra.mxu0 %v178_v35  ;;  %269 = vmatpush.msra.mxu2 %v180_v36  ;;  %v154_v59 = vld [vmem:[%s153_s27] sm:$0x1]  ;;  %v150_v61 = vmax.f32 %v149_v56, 0.0  ;;  %141 = vst [vmem:[#allocation2 + $0x3] sm:$0x1] %v140_v54  ;;  %v1859_v13 = vld [vmem:[#allocation12 + $0x170] sm:$0xff] }
  0x35   :  { %248 = vmatpush.msra.mxu1 %v182_v41  ;;  %v1849_v60 = vld [vmem:[#allocation12 + $0x78] sm:$0xff]  ;;  %350 = vmatpush.msra.mxu3 %v1843_v53  ;;  %v155_v1 = vmax.f32 %v154_v59, 0.0  ;;  %146 = vst [vmem:[#allocation2 + $0x4] sm:$0x1] %v145_v58  ;;  %v167_v14 = vld [vmem:[#allocation10 + $0x20] sm:$0xff]  ;;  %v1862_v15 = vld [vmem:[#allocation12 + $0x30] sm:$0xff] }
  0x36   :  { %230 = vmatpush.msra.mxu0 %v175_v39  ;;  %270 = vmatpush.msra.mxu2 %v177_v40  ;;  %v159_v62 = vld [vmem:[%s158_s28] sm:$0x1]  ;;  %151 = vst [vmem:[#allocation2 + $0x5] sm:$0x1] %v150_v61  ;;  %v164_v18 = vld [vmem:[#allocation10 + $0x8] sm:$0xff]  ;;  %v1872_v22 = vld [vmem:[#allocation12 + $0x140] sm:$0xff] }
  0x37   :  { %249 = vmatpush.msra.mxu1 %v179_v48  ;;  %v160_v4 = vmax.f32 %v159_v62, 0.0  ;;  %v166_v5 = vld [vmem:[#allocation10 + $0x18] sm:$0xff]  ;;  %351 = vmatpush.msra.mxu3 %v1849_v60  ;;  %156 = vst [vmem:[#allocation2 + $0x6] sm:$0x1] %v155_v1  ;;  %v1877_v23 = vld [vmem:[#allocation12 + $0x128] sm:$0xff]  ;;  %v1881_v26 = vld [vmem:[#allocation12] sm:$0xff] }
  0x38   :  { %231 = vmatpush.msra.mxu0 %v172_v46  ;;  %271 = vmatpush.msra.mxu2 %v174_v47  ;;  %v170_v7 = vld [vmem:[#allocation10 + $0x38] sm:$0xff]  ;;  %2477 = vst [vmem:[#allocation25_spill] sm:$0xff] %v1862_v15  ;;  %v1883_v27 = vld [vmem:[#allocation12 + $0x160] sm:$0xff]  ;;  %v1891_v30 = vld [vmem:[#allocation12 + $0x110] sm:$0xff] }
  0x39   :  { %250 = vmatpush.msra.mxu1 %v176_v57  ;;  %352 = vmatpush.msra.mxu3 %v1853_v3  ;;  %161 = vst [vmem:[#allocation2 + $0x7] sm:$0x1] %v160_v4  ;;  %v1864_v17 = vld [vmem:[#allocation12 + $0x158] sm:$0xff]  ;;  %v1894_v31 = vld [vmem:[#allocation12 + $0x148] sm:$0xff]  ;;  %v1902_v34 = vld [vmem:[#allocation12 + $0x130] sm:$0xff] }
  0x3a   :  { %232 = vmatpush.msra.mxu0 %v169_v63  ;;  %272 = vmatpush.msra.mxu2 %v171_v0  ;;  %v1867_v19 = vld [vmem:[#allocation12 + $0x18] sm:$0xff]  ;;  %2479 = vst [vmem:[#allocation27_spill] sm:$0xff] %v1881_v26  ;;  %v1904_v35 = vld [vmem:[#allocation12 + $0xe0] sm:$0xff]  ;;  %v1912_v37 = vld [vmem:[#allocation12 + $0xc8] sm:$0xff] }
  0x3b   :  { %251 = vmatpush.msra.mxu1 %v173_v2  ;;  %353 = vmatpush.msra.mxu3 %v1856_v8  ;;  %2478 = vst [vmem:[#allocation26_spill] sm:$0xff] %v1867_v19  ;;  %v1869_v21 = vld [vmem:[#allocation12 + $0x178] sm:$0xff]  ;;  %v1917_v39 = vld [vmem:[#allocation12 + $0x100] sm:$0xff]  ;;  %v1920_v40 = vld [vmem:[#allocation12 + $0xb0] sm:$0xff] }
  0x3c   :  { %233 = vmatpush.msra.mxu0 %v166_v5  ;;  %273 = vmatpush.msra.mxu2 %v168_v6  ;;  %v1889_v29 = vld [vmem:[%s2454_s7] sm:$0x1]  ;;  %v1925_v41 = vld [vmem:[#allocation12 + $0xe8] sm:$0xff]  ;;  %v1933_v44 = vld [vmem:[#allocation12 + $0xd0] sm:$0xff] }
  0x3d   :  { %252 = vmatpush.msra.mxu1 %v170_v7  ;;  %354 = vmatpush.msra.mxu3 %v1862_v15  ;;  %v1897_v33 = vld [vmem:[#allocation12 + $0xf8] sm:$0xff]  ;;  %v1936_v45 = vld [vmem:[#allocation12 + $0x80] sm:$0xff]  ;;  %v1944_v47 = vld [vmem:[#allocation12 + $0x68] sm:$0xff] }
  0x3e   :  { %234 = vmatpush.msra.mxu0 %v163_v9  ;;  %274 = vmatpush.msra.mxu2 %v165_v11  ;;  %v1909_v36 = vld [vmem:[#allocation12 + $0x118] sm:$0xff]  ;;  %v1949_v48 = vld [vmem:[#allocation12 + $0xa0] sm:$0xff]  ;;  %v1952_v49 = vld [vmem:[#allocation12 + $0x50] sm:$0xff] }
  0x3f   :  { %253 = vmatpush.msra.mxu1 %v167_v14  ;;  %355 = vmatpush.msra.mxu3 %v1867_v19  ;;  %v1928_v43 = vld [vmem:[#allocation12 + $0x98] sm:$0xff]  ;;  %v1957_v50 = vld [vmem:[#allocation12 + $0x88] sm:$0xff]  ;;  %v1965_v52 = vld [vmem:[#allocation12 + $0x70] sm:$0xff] }
  0x40   :  { %361 = vmatpush.msrb.mxu0 %v1859_v13  ;;  %456 = vmatpush.msrb.mxu2 %v1799_v10  ;;  %v162_v25 = vld [vmem:[#allocation2] sm:$0xff]  ;;  %v1968_v54 = vld [vmem:[#allocation12 + $0x20] sm:$0xff]  ;;  %v1976_v56 = vld [vmem:[#allocation12 + $0x8] sm:$0xff] }
  0x41   :  { %254 = vmatpush.msra.mxu1 %v164_v18  ;;  %275 = vmatmul.f32.vlgmr.msra.gmra.mxu2 %v162_v25  ;;  %v1941_v46 = vld [vmem:[#allocation12 + $0xb8] sm:$0xff]  ;;  %2481 = vst [vmem:[#allocation29_spill] sm:$0xff] %v1968_v54  ;;  %v1981_v57 = vld [vmem:[#allocation12 + $0x40] sm:$0xff]  ;;  %v1987_v58 = vld [vmem:[#allocation12 + $0x28] sm:$0xff] }
  0x42   :  { %362 = vmatpush.msrb.mxu0 %v1864_v17  ;;  %457 = vmatpush.msrb.mxu2 %v1803_v12  ;;  %v1960_v51 = vld [vmem:[#allocation12 + $0x38] sm:$0xff]  ;;  %2482 = vst [vmem:[#allocation30_spill] sm:$0xff] %v1976_v56  ;;  %v1992_v59 = vld [vmem:[#allocation12 + $0x10] sm:$0xff]  ;;  %v211_v61 = vld [vmem:[#allocation13] ss:$2 sm:$0x7] }
  0x43   :  { %381 = vmatpush.msrb.mxu1 %v1869_v21  ;;  %235 = vmatmul.f32.vlgmr.msra.gmra.mxu0 %v162_v25  ;;  %2480 = vst [vmem:[#allocation28_spill] sm:$0xff] %v1960_v51  ;;  %v1973_v55 = vld [vmem:[#allocation12 + $0x58] sm:$0xff]  ;;  %v213_v62 = vperm.slane %v211_v61, 0  ;;  %v214_v63 = vperm.slane %v211_v61, 1  ;;  %v215_v5 = vperm.slane %v211_v61, 2 }
  0x44   :  { %363 = vmatpush.msrb.mxu0 %v1872_v22  ;;  %255 = vmatmul.f32.vlgmr.msra.gmra.mxu1 %v162_v25  ;;  %2483 = vst [vmem:[#allocation31_spill] sm:$0xff] %v1987_v58  ;;  %v331_v7 = vld [vmem:[#allocation13 + $0x1] ss:$2 sm:$0x7] }
  0x45   :  { %356 = vmatpush.msra.mxu3 %v1881_v26  ;;  %382 = vmatpush.msrb.mxu1 %v1883_v27  ;;  %2484 = vst [vmem:[#allocation32_spill] sm:$0xff] %v1992_v59  ;;  %v2101_v11 = vperm.slane %v331_v7, 0 }
  0x46   :  { %364 = vmatpush.msrb.mxu0 %v1877_v23  ;;  %357 = vmatmul.f32.vlgmr.msra.gmra.mxu3 %v1889_v29 }
  0x47   :  { %383 = vmatpush.msrb.mxu1 %v1894_v31  ;;  %476 = vmatpush.msrb.mxu3 %v1859_v13  ;;  %2485 = vst [vmem:[#allocation33_spill] sm:$0xff] %v2101_v11 }
  0x48   :  { %365 = vmatpush.msrb.mxu0 %v1891_v30  ;;  %458 = vmatpush.msrb.mxu2 %v1810_v16 }
  0x49   :  { %384 = vmatpush.msrb.mxu1 %v1902_v34  ;;  %477 = vmatpush.msrb.mxu3 %v1864_v17 }
  0x4a   :  { %366 = vmatpush.msrb.mxu0 %v1897_v33  ;;  %459 = vmatpush.msrb.mxu2 %v1817_v20 }
  0x4b   :  { %385 = vmatpush.msrb.mxu1 %v1909_v36  ;;  %478 = vmatpush.msrb.mxu3 %v1872_v22 }
  0x4c   :  { %367 = vmatpush.msrb.mxu0 %v1904_v35  ;;  %460 = vmatpush.msrb.mxu2 %v1824_v24 }
  0x4d   :  { %386 = vmatpush.msrb.mxu1 %v1917_v39  ;;  %479 = vmatpush.msrb.mxu3 %v1877_v23 }
  0x4e   :  { %368 = vmatpush.msrb.mxu0 %v1912_v37  ;;  %461 = vmatpush.msrb.mxu2 %v1827_v28 }
  0x4f   :  { %387 = vmatpush.msrb.mxu1 %v1925_v41  ;;  %480 = vmatpush.msrb.mxu3 %v1891_v30 }
  0x50   :  { %369 = vmatpush.msrb.mxu0 %v1920_v40  ;;  %462 = vmatpush.msrb.mxu2 %v1830_v32 }
  0x51   :  { %388 = vmatpush.msrb.mxu1 %v1933_v44  ;;  %481 = vmatpush.msrb.mxu3 %v1897_v33 }
  0x52   :  { %370 = vmatpush.msrb.mxu0 %v1928_v43  ;;  %463 = vmatpush.msrb.mxu2 %v1833_v38 }
  0x53   :  { %389 = vmatpush.msrb.mxu1 %v1941_v46  ;;  %482 = vmatpush.msrb.mxu3 %v1904_v35 }
  0x54   :  { %371 = vmatpush.msrb.mxu0 %v1936_v45  ;;  %464 = vmatpush.msrb.mxu2 %v1836_v42 }
  0x55   :  { %390 = vmatpush.msrb.mxu1 %v1949_v48  ;;  %483 = vmatpush.msrb.mxu3 %v1912_v37 }
  0x56   :  { %372 = vmatpush.msrb.mxu0 %v1944_v47  ;;  %465 = vmatpush.msrb.mxu2 %v1843_v53 }
  0x57   :  { %391 = vmatpush.msrb.mxu1 %v1957_v50  ;;  %484 = vmatpush.msrb.mxu3 %v1920_v40 }
  0x58   :  { %373 = vmatpush.msrb.mxu0 %v1952_v49  ;;  %466 = vmatpush.msrb.mxu2 %v1849_v60 }
  0x59   :  { %392 = vmatpush.msrb.mxu1 %v1965_v52  ;;  %485 = vmatpush.msrb.mxu3 %v1928_v43 }
  0x5a   :  { %374 = vmatpush.msrb.mxu0 %v1960_v51  ;;  %467 = vmatpush.msrb.mxu2 %v1853_v3 }
  0x5b   :  { %393 = vmatpush.msrb.mxu1 %v1973_v55  ;;  %486 = vmatpush.msrb.mxu3 %v1936_v45 }
  0x5c   :  { %375 = vmatpush.msrb.mxu0 %v1968_v54  ;;  %468 = vmatpush.msrb.mxu2 %v1856_v8 }
  0x5d   :  { %394 = vmatpush.msrb.mxu1 %v1981_v57  ;;  %487 = vmatpush.msrb.mxu3 %v1944_v47 }
  0x5e   :  { %376 = vmatpush.msrb.mxu0 %v1976_v56  ;;  %469 = vmatpush.msrb.mxu2 %v1862_v15 }
  0x5f   :  { %377 = vmatmul.f32.vlgmr.msrb.gmra.mxu0 %v1889_v29  ;;  %395 = vmatpush.msrb.mxu1 %v1987_v58 }
  0x60   :  { %496 = vmatpush.msra.mxu0 %v1869_v21  ;;  %488 = vmatpush.msrb.mxu3 %v1952_v49 }
  0x61   :  { %396 = vmatpush.msrb.mxu1 %v1992_v59  ;;  %470 = vmatpush.msrb.mxu2 %v1867_v19 }
  0x62   :  { %497 = vmatpush.msra.mxu0 %v1883_v27  ;;  %397 = vmatmul.f32.vlgmr.msrb.gmra.mxu1 %v1889_v29 }
  0x63   :  { %489 = vmatpush.msrb.mxu3 %v1960_v51  ;;  %471 = vmatpush.msrb.mxu2 %v1881_v26 }
  0x64   :  { %498 = vmatpush.msra.mxu0 %v1894_v31  ;;  %571 = vmatpush.msra.mxu1 %v1799_v10 }
  0x65   :  { %490 = vmatpush.msrb.mxu3 %v1968_v54  ;;  %591 = vmatpush.msra.mxu2 %v1859_v13 }
  0x66   :  { %499 = vmatpush.msra.mxu0 %v1902_v34  ;;  %572 = vmatpush.msra.mxu1 %v1803_v12 }
  0x67   :  { %491 = vmatpush.msrb.mxu3 %v1976_v56  ;;  %592 = vmatpush.msra.mxu2 %v1864_v17 }
  0x68   :  { %500 = vmatpush.msra.mxu0 %v1909_v36  ;;  %573 = vmatpush.msra.mxu1 %v1810_v16 }
  0x69   :  { %611 = vmatpush.msra.mxu3 %v1869_v21  ;;  %593 = vmatpush.msra.mxu2 %v1872_v22 }
  0x6a   :  { %501 = vmatpush.msra.mxu0 %v1917_v39  ;;  %574 = vmatpush.msra.mxu1 %v1817_v20 }
  0x6b   :  { %612 = vmatpush.msra.mxu3 %v1883_v27  ;;  %594 = vmatpush.msra.mxu2 %v1877_v23 }
  0x6c   :  { %502 = vmatpush.msra.mxu0 %v1925_v41  ;;  %575 = vmatpush.msra.mxu1 %v1824_v24 }
  0x6d   :  { %613 = vmatpush.msra.mxu3 %v1894_v31  ;;  %595 = vmatpush.msra.mxu2 %v1891_v30 }
  0x6e   :  { %503 = vmatpush.msra.mxu0 %v1933_v44  ;;  %576 = vmatpush.msra.mxu1 %v1827_v28 }
  0x6f   :  { %614 = vmatpush.msra.mxu3 %v1902_v34  ;;  %596 = vmatpush.msra.mxu2 %v1897_v33 }
  0x70   :  { %504 = vmatpush.msra.mxu0 %v1941_v46  ;;  %577 = vmatpush.msra.mxu1 %v1830_v32 }
  0x71   :  { %615 = vmatpush.msra.mxu3 %v1909_v36  ;;  %597 = vmatpush.msra.mxu2 %v1904_v35 }
  0x72   :  { %505 = vmatpush.msra.mxu0 %v1949_v48  ;;  %578 = vmatpush.msra.mxu1 %v1833_v38 }
  0x73   :  { %616 = vmatpush.msra.mxu3 %v1917_v39  ;;  %598 = vmatpush.msra.mxu2 %v1912_v37 }
  0x74   :  { %506 = vmatpush.msra.mxu0 %v1957_v50  ;;  %579 = vmatpush.msra.mxu1 %v1836_v42 }
  0x75   :  { %617 = vmatpush.msra.mxu3 %v1925_v41  ;;  %599 = vmatpush.msra.mxu2 %v1920_v40 }
  0x76   :  { %507 = vmatpush.msra.mxu0 %v1965_v52  ;;  %580 = vmatpush.msra.mxu1 %v1843_v53 }
  0x77   :  { %618 = vmatpush.msra.mxu3 %v1933_v44  ;;  %600 = vmatpush.msra.mxu2 %v1928_v43 }
  0x78   :  { %508 = vmatpush.msra.mxu0 %v1973_v55  ;;  %581 = vmatpush.msra.mxu1 %v1849_v60 }
  0x79   :  { %619 = vmatpush.msra.mxu3 %v1941_v46  ;;  %601 = vmatpush.msra.mxu2 %v1936_v45 }
  0x7a   :  { %509 = vmatpush.msra.mxu0 %v1981_v57  ;;  %582 = vmatpush.msra.mxu1 %v1853_v3 }
  0x7b   :  { %620 = vmatpush.msra.mxu3 %v1949_v48  ;;  %602 = vmatpush.msra.mxu2 %v1944_v47 }
  0x7c   :  { %510 = vmatpush.msra.mxu0 %v1987_v58  ;;  %583 = vmatpush.msra.mxu1 %v1856_v8 }
  0x7d   :  { %621 = vmatpush.msra.mxu3 %v1957_v50  ;;  %603 = vmatpush.msra.mxu2 %v1952_v49 }
  0x7e   :  { %511 = vmatpush.msra.mxu0 %v1992_v59  ;;  %584 = vmatpush.msra.mxu1 %v1862_v15 }
  0x7f   :  { %622 = vmatpush.msra.mxu3 %v1965_v52  ;;  %604 = vmatpush.msra.mxu2 %v1960_v51 }
  0x80   :  { %686 = vmatpush.msrb.mxu0 %v1799_v10  ;;  %585 = vmatpush.msra.mxu1 %v1867_v19 }
  0x81   :  { %623 = vmatpush.msra.mxu3 %v1973_v55  ;;  %605 = vmatpush.msra.mxu2 %v1968_v54 }
  0x82   :  { %687 = vmatpush.msrb.mxu0 %v1803_v12  ;;  %586 = vmatpush.msra.mxu1 %v1881_v26 }
  0x83   :  { %624 = vmatpush.msra.mxu3 %v1981_v57  ;;  %606 = vmatpush.msra.mxu2 %v1976_v56 }
  0x84   :  { %688 = vmatpush.msrb.mxu0 %v1810_v16  ;;  %706 = vmatpush.msrb.mxu1 %v1859_v13 }
  0x85   :  { %625 = vmatpush.msra.mxu3 %v1987_v58 }
  0x86   :  { %689 = vmatpush.msrb.mxu0 %v1817_v20  ;;  %707 = vmatpush.msrb.mxu1 %v1864_v17 }
  0x87   :  { %626 = vmatpush.msra.mxu3 %v1992_v59  ;;  %v2104_v59 = vperm.slane %v331_v7, 1 }
  0x88   :  { %690 = vmatpush.msrb.mxu0 %v1824_v24  ;;  %708 = vmatpush.msrb.mxu1 %v1872_v22 }
  0x89   :  { %2486 = vst [vmem:[#allocation34_spill] sm:$0xff] %v2104_v59 }
  0x8a   :  { %691 = vmatpush.msrb.mxu0 %v1827_v28  ;;  %709 = vmatpush.msrb.mxu1 %v1877_v23 }
  0x8c   :  { %692 = vmatpush.msrb.mxu0 %v1830_v32  ;;  %710 = vmatpush.msrb.mxu1 %v1891_v30 }
  0x8e   :  { %693 = vmatpush.msrb.mxu0 %v1833_v38  ;;  %711 = vmatpush.msrb.mxu1 %v1897_v33 }
  0x90   :  { %694 = vmatpush.msrb.mxu0 %v1836_v42  ;;  %712 = vmatpush.msrb.mxu1 %v1904_v35 }
  0x92   :  { %695 = vmatpush.msrb.mxu0 %v1843_v53  ;;  %713 = vmatpush.msrb.mxu1 %v1912_v37 }
  0x94   :  { %696 = vmatpush.msrb.mxu0 %v1849_v60  ;;  %714 = vmatpush.msrb.mxu1 %v1920_v40 }
  0x96   :  { %697 = vmatpush.msrb.mxu0 %v1853_v3  ;;  %715 = vmatpush.msrb.mxu1 %v1928_v43 }
  0x98   :  { %698 = vmatpush.msrb.mxu0 %v1856_v8  ;;  %716 = vmatpush.msrb.mxu1 %v1936_v45 }
  0x9a   :  { %699 = vmatpush.msrb.mxu0 %v1862_v15  ;;  %717 = vmatpush.msrb.mxu1 %v1944_v47 }
  0x9c   :  { %700 = vmatpush.msrb.mxu0 %v1867_v19  ;;  %718 = vmatpush.msrb.mxu1 %v1952_v49 }
  0x9e   :  { %701 = vmatpush.msrb.mxu0 %v1881_v26  ;;  %719 = vmatpush.msrb.mxu1 %v1960_v51 }
  0xa0   :  { %720 = vmatpush.msrb.mxu1 %v1968_v54 }
  0xa2   :  { %721 = vmatpush.msrb.mxu1 %v1976_v56 }
  0xc0   :  { %v236_v0 = vpop.f32.mrf.mxu0 }
  0xc1   :  { %v237_v1 = vadd.f32 %v236_v0, %v213_v62  ;;  %v256_v2 = vpop.f32.mrf.mxu1 }
  0xc2   :  { %v257_v4 = vadd.f32 %v256_v2, %v214_v63 }
  0xc3   :  { %279 = vst [vmem:[#allocation3] sm:$0xff] %v237_v1 }
  0xc4   :  { %280 = vst [vmem:[#allocation3 + $0x8] sm:$0xff] %v257_v4  ;;  %v276_v6 = vpop.f32.mrf.mxu2 }
  0xc5   :  { %v277_v9 = vadd.f32 %v276_v6, %v215_v5 }
  0xc7   :  { %281 = vst [vmem:[#allocation3 + $0x10] sm:$0xff] %v277_v9 }
  0xc9   :  { %v358_v14 = vpop.f32.mrf.mxu3 }
  0xca   :  { %v359_v18 = vadd.f32 %v358_v14, %v2101_v11  ;;  %v2107_v14 = vperm.slane %v331_v7, 2 }
  0xce   :  { %v333_v25 = vld [vmem:[#allocation3] ss:$8 sm:$0x7] }
  0xcf   :  { %v401_v56 = vadd.f32 %v359_v18, %v333_v25  ;;  %v422_v0 = vrot.slane %v333_v25, 1 }
  0xd1   :  { %v1364_v26 = vmul.f32 -1.442695, %v401_v56 }
  0xd3   :  { %1393 = vpow2.f32 %v1364_v26 }
  0xd9   :  { %v1394_v63 = vpop.eup %1393 }
  0xda   :  { %v405_v1 = vadd.f32 1.0, %v1394_v63 }
  0xdc   :  { %v378_v62 = vpop.f32.mrf.mxu0  ;;  %1395 = vrcp.f32 %v405_v1  ;;  %v417_v11 = vand.u32 2147483648, %v405_v1  ;;  %vm411_vm0 = vweird.f32 %v405_v1  ;;  %v415_v19 = vand.u32 2147483647, %v405_v1 }
  0xdd   :  { %v379_v61 = vadd.f32 %v378_v62, %v2104_v59  ;;  %v445_v59 = vrot.slane %v333_v25, 2 }
  0xde   :  { %vm416_vm3 = vcmp.eq.f32.partialorder %v415_v19, 8.507059e+37 }
  0xdf   :  { %v424_v2 = vadd.f32 %v422_v0, %v379_v61  ;;  %v398_v26 = vpop.f32.mrf.mxu1  ;;  %v418_v61 = vor.u32 1.1754944e-38, %v417_v11 }
  0xe0   :  { %v399_v62 = vadd.f32 %v398_v26, %v2107_v14 }
  0xe1   :  { %v1365_v4 = vmul.f32 -1.442695, %v424_v2 }
  0xe2   :  { %v1396_v5 = vpop.eup %1395 }
  0xe3   :  { %1397 = vpow2.f32 %v1365_v4  ;;  %v407_v6 = vmul.f32 %v1396_v5, %v405_v1  ;;  %vm412_vm1 = vweird.f32 %v1396_v5 }
  0xe4   :  { %vm413_vm2 = vmor %vm411_vm0, %vm412_vm1 }
  0xe5   :  { %v408_v18 = vsub.f32 1.0, %v407_v6 }
  0xe7   :  { %v409_v54 = vmul.f32 %v1396_v5, %v408_v18 }
  0xe9   :  { %v1398_v9 = vpop.eup %1397  ;;  %v410_v63 = vadd.f32 %v1396_v5, %v409_v54 }
  0xea   :  { %v428_v56 = vadd.f32 1.0, %v1398_v9 }
  0xeb   :  { %v414_v0 = vsel %vm413_vm2, %v1396_v5, %v410_v63 }
  0xec   :  { %1399 = vrcp.f32 %v428_v56  ;;  %v419_v2 = vsel %vm416_vm3, %v418_v61, %v414_v0  ;;  %v440_v51 = vand.u32 2147483648, %v428_v56  ;;  %v438_v15 = vand.u32 2147483647, %v428_v56  ;;  %v2496_v0 = vld [vmem:[#allocation34_spill] sm:$0xff] }
  0xed   :  { %v444_v4 = vmul.f32 %v419_v2, %v399_v62  ;;  %vm434_vm5 = vweird.f32 %v428_v56 }
  0xee   :  { %v441_v54 = vor.u32 1.1754944e-38, %v440_v51  ;;  %vm439_vm7 = vcmp.eq.f32.partialorder %v438_v15, 8.507059e+37  ;;  %v2493_v15 = vld [vmem:[#allocation27_spill] sm:$0xff] }
  0xef   :  { %v447_v9 = vadd.f32 %v445_v59, %v444_v4  ;;  %v455_v51 = vld [vmem:[#allocation3 + $0x1] ss:$8 sm:$0x7] }
  0xf0   :  { %v537_v4 = vrot.slane %v455_v51, 1 }
  0xf1   :  { %1401 = vtanh.f32 %v447_v9 }
  0xf2   :  { %v1400_v7 = vpop.eup %1399 }
  0xf3   :  { %v430_v6 = vmul.f32 %v1400_v7, %v428_v56  ;;  %vm435_vm4 = vweird.f32 %v1400_v7  ;;  %v2495_v56 = vld [vmem:[#allocation33_spill] sm:$0xff] }
  0xf4   :  { %vm436_vm6 = vmor %vm434_vm5, %vm435_vm4 }
  0xf5   :  { %v431_v58 = vsub.f32 1.0, %v430_v6 }
  0xf7   :  { %v432_v18 = vmul.f32 %v1400_v7, %v431_v58  ;;  %v1402_v5 = vpop.eup %1401 }
  0xf9   :  { %v433_v1 = vadd.f32 %v1400_v7, %v432_v18 }
  0xfb   :  { %v437_v26 = vsel %vm436_vm6, %v1400_v7, %v433_v1 }
  0xfc   :  { %v442_v11 = vsel %vm439_vm7, %v441_v54, %v437_v26 }
  0xfd   :  { %v449_v19 = vsub.f32 1.0, %v442_v11  ;;  %v451_v25 = vmul.f32 %v442_v11, %v1889_v29  ;;  %v2494_v29 = vld [vmem:[#allocation30_spill] sm:$0xff] }
  0xff   :  { %v450_v62 = vmul.f32 %v1402_v5, %v449_v19 }
 0x101   :  { %v2111_v63 = vadd.f32 %v451_v25, %v450_v62 }
 0x103   :  { %453 = vst [vmem:[#allocation4] sm:$0x1] %v2111_v63  ;;  %472 = vmatmul.f32.vlgmr.msrb.gmra.mxu2 %v2111_v63  ;;  %492 = vmatmul.f32.vlgmr.msrb.gmra.mxu3 %v2111_v63 }
 0x104   :  { %512 = vmatmul.f32.vlgmr.msra.gmra.mxu0 %v2111_v63  ;;  %726 = vmatpush.msrb.mxu2 %v1869_v21 }
 0x105   :  { %801 = vmatpush.msrb.mxu3 %v1799_v10  ;;  %821 = vmatpush.msra.mxu0 %v1859_v13  ;;  %v2487_v10 = vld [vmem:[#allocation25_spill] sm:$0xff] }
 0x106   :  { %727 = vmatpush.msrb.mxu2 %v1883_v27 }
 0x107   :  { %802 = vmatpush.msrb.mxu3 %v1803_v12  ;;  %822 = vmatpush.msra.mxu0 %v1864_v17  ;;  %v2488_v12 = vld [vmem:[#allocation28_spill] sm:$0xff] }
 0x108   :  { %728 = vmatpush.msrb.mxu2 %v1894_v31 }
 0x109   :  { %803 = vmatpush.msrb.mxu3 %v1810_v16  ;;  %823 = vmatpush.msra.mxu0 %v1872_v22  ;;  %v2489_v16 = vld [vmem:[#allocation31_spill] sm:$0xff] }
 0x10a   :  { %729 = vmatpush.msrb.mxu2 %v1902_v34 }
 0x10b   :  { %804 = vmatpush.msrb.mxu3 %v1817_v20  ;;  %824 = vmatpush.msra.mxu0 %v1877_v23  ;;  %v2490_v20 = vld [vmem:[#allocation26_spill] sm:$0xff] }
 0x10c   :  { %730 = vmatpush.msrb.mxu2 %v1909_v36 }
 0x10d   :  { %805 = vmatpush.msrb.mxu3 %v1824_v24  ;;  %825 = vmatpush.msra.mxu0 %v1891_v30  ;;  %v2491_v24 = vld [vmem:[#allocation29_spill] sm:$0xff] }
 0x10e   :  { %731 = vmatpush.msrb.mxu2 %v1917_v39 }
 0x10f   :  { %806 = vmatpush.msrb.mxu3 %v1827_v28  ;;  %826 = vmatpush.msra.mxu0 %v1897_v33  ;;  %v2492_v28 = vld [vmem:[#allocation32_spill] sm:$0xff] }
 0x110   :  { %732 = vmatpush.msrb.mxu2 %v1925_v41 }
 0x111   :  { %807 = vmatpush.msrb.mxu3 %v1830_v32  ;;  %827 = vmatpush.msra.mxu0 %v1904_v35 }
 0x112   :  { %733 = vmatpush.msrb.mxu2 %v1933_v44 }
 0x113   :  { %808 = vmatpush.msrb.mxu3 %v1833_v38  ;;  %828 = vmatpush.msra.mxu0 %v1912_v37 }
 0x114   :  { %734 = vmatpush.msrb.mxu2 %v1941_v46 }
 0x115   :  { %809 = vmatpush.msrb.mxu3 %v1836_v42  ;;  %829 = vmatpush.msra.mxu0 %v1920_v40 }
 0x116   :  { %735 = vmatpush.msrb.mxu2 %v1949_v48 }
 0x117   :  { %810 = vmatpush.msrb.mxu3 %v1843_v53  ;;  %830 = vmatpush.msra.mxu0 %v1928_v43 }
 0x118   :  { %736 = vmatpush.msrb.mxu2 %v1957_v50 }
 0x119   :  { %811 = vmatpush.msrb.mxu3 %v1849_v60  ;;  %831 = vmatpush.msra.mxu0 %v1936_v45 }
 0x11a   :  { %737 = vmatpush.msrb.mxu2 %v1965_v52 }
 0x11b   :  { %812 = vmatpush.msrb.mxu3 %v1853_v3  ;;  %832 = vmatpush.msra.mxu0 %v1944_v47 }
 0x11c   :  { %738 = vmatpush.msrb.mxu2 %v1973_v55 }
 0x11d   :  { %813 = vmatpush.msrb.mxu3 %v1856_v8  ;;  %833 = vmatpush.msra.mxu0 %v1952_v49 }
 0x11e   :  { %739 = vmatpush.msrb.mxu2 %v1981_v57 }
 0x11f   :  { %814 = vmatpush.msrb.mxu3 %v2487_v10  ;;  %834 = vmatpush.msra.mxu0 %v2488_v12 }
 0x120   :  { %740 = vmatpush.msrb.mxu2 %v2489_v16 }
 0x121   :  { %815 = vmatpush.msrb.mxu3 %v2490_v20  ;;  %835 = vmatpush.msra.mxu0 %v2491_v24 }
 0x122   :  { %741 = vmatpush.msrb.mxu2 %v2492_v28 }
 0x123   :  { %816 = vmatpush.msrb.mxu3 %v2493_v15  ;;  %836 = vmatpush.msra.mxu0 %v2494_v29 }
 0x186   :  { %v473_v58 = vpop.f32.mrf.mxu2  ;;  %v493_v59 = vpop.f32.mrf.mxu3 }
 0x187   :  { %v474_v61 = vadd.f32 %v473_v58, %v2495_v56  ;;  %v494_v2 = vadd.f32 %v493_v59, %v2496_v0 }
 0x189   :  { %v516_v7 = vadd.f32 %v474_v61, %v455_v51  ;;  %v539_v6 = vadd.f32 %v537_v4, %v494_v2  ;;  %v513_v2 = vpop.f32.mrf.mxu0 }
 0x18b   :  { %v1366_v9 = vmul.f32 -1.442695, %v516_v7  ;;  %v1367_v18 = vmul.f32 -1.442695, %v539_v6 }
 0x18d   :  { %1403 = vpow2.f32 %v1366_v9  ;;  %v514_v9 = vadd.f32 %v513_v2, %v2107_v14 }
 0x18e   :  { %1405 = vpow2.f32 %v1367_v18 }
 0x193   :  { %v1404_v1 = vpop.eup %1403 }
 0x194   :  { %v1406_v54 = vpop.eup %1405  ;;  %v520_v26 = vadd.f32 1.0, %v1404_v1 }
 0x195   :  { %v543_v11 = vadd.f32 1.0, %v1406_v54 }
 0x196   :  { %1407 = vrcp.f32 %v520_v26  ;;  %v532_v56 = vand.u32 2147483648, %v520_v26  ;;  %v530_v61 = vand.u32 2147483647, %v520_v26  ;;  %vm526_vm9 = vweird.f32 %v520_v26 }
 0x197   :  { %1409 = vrcp.f32 %v543_v11  ;;  %v555_v15 = vand.u32 2147483648, %v543_v11  ;;  %vm549_vm13 = vweird.f32 %v543_v11 }
 0x198   :  { %v533_v6 = vor.u32 1.1754944e-38, %v532_v56  ;;  %vm531_vm11 = vcmp.eq.f32.partialorder %v530_v61, 8.507059e+37 }
 0x19c   :  { %v1408_v19 = vpop.eup %1407 }
 0x19d   :  { %v1410_v5 = vpop.eup %1409  ;;  %v522_v62 = vmul.f32 %v1408_v19, %v520_v26  ;;  %vm527_vm8 = vweird.f32 %v1408_v19 }
 0x19e   :  { %v545_v25 = vmul.f32 %v1410_v5, %v543_v11  ;;  %vm528_vm10 = vmor %vm526_vm9, %vm527_vm8  ;;  %vm550_vm12 = vweird.f32 %v1410_v5 }
 0x19f   :  { %v523_v58 = vsub.f32 1.0, %v522_v62  ;;  %v560_v62 = vrot.slane %v455_v51, 2  ;;  %vm551_vm14 = vmor %vm549_vm13, %vm550_vm12  ;;  %v2201_v51 = vld [vmem:[#allocation12 + $0xf0] sm:$0xff] }
 0x1a0   :  { %v546_v59 = vsub.f32 1.0, %v545_v25  ;;  %v553_v25 = vand.u32 2147483647, %v543_v11 }
 0x1a1   :  { %v524_v0 = vmul.f32 %v1408_v19, %v523_v58 }
 0x1a2   :  { %v547_v4 = vmul.f32 %v1410_v5, %v546_v59  ;;  %vm554_vm15 = vcmp.eq.f32.partialorder %v553_v25, 8.507059e+37 }
 0x1a3   :  { %v525_v7 = vadd.f32 %v1408_v19, %v524_v0  ;;  %v556_v0 = vor.u32 1.1754944e-38, %v555_v15  ;;  %v2176_v15 = vld [vmem:[#allocation12 + $0x168] sm:$0xff] }
 0x1a4   :  { %v548_v54 = vadd.f32 %v1410_v5, %v547_v4  ;;  %v2501_v4 = vld [vmem:[#allocation34_spill] sm:$0xff] }
 0x1a5   :  { %v529_v18 = vsel %vm528_vm10, %v1408_v19, %v525_v7 }
 0x1a6   :  { %v534_v1 = vsel %vm531_vm11, %v533_v6, %v529_v18  ;;  %v552_v28 = vsel %vm551_vm14, %v1410_v5, %v548_v54 }
 0x1a7   :  { %v559_v29 = vmul.f32 %v534_v1, %v514_v9  ;;  %v557_v26 = vsel %vm554_vm15, %v556_v0, %v552_v28  ;;  %v2186_v28 = vld [vmem:[#allocation12 + $0x138] sm:$0xff] }
 0x1a8   :  { %v564_v56 = vsub.f32 1.0, %v557_v26  ;;  %v566_v19 = vmul.f32 %v557_v26, %v2111_v63  ;;  %v2181_v63 = vld [vmem:[#allocation12 + $0x150] sm:$0xff] }
 0x1a9   :  { %v562_v58 = vadd.f32 %v560_v62, %v559_v29  ;;  %v2191_v29 = vld [vmem:[#allocation12 + $0x120] sm:$0xff] }
 0x1ab   :  { %1411 = vtanh.f32 %v562_v58 }
 0x1b1   :  { %v1412_v59 = vpop.eup %1411 }
 0x1b2   :  { %v565_v2 = vmul.f32 %v1412_v59, %v564_v56 }
 0x1b4   :  { %v2169_v61 = vadd.f32 %v566_v19, %v565_v2 }
 0x1b6   :  { %568 = vst [vmem:[#allocation4 + $0x1] sm:$0x1] %v2169_v61  ;;  %587 = vmatmul.f32.vlgmr.msra.gmra.mxu1 %v2169_v61  ;;  %607 = vmatmul.f32.vlgmr.msra.gmra.mxu2 %v2169_v61 }
 0x1b7   :  { %627 = vmatmul.f32.vlgmr.msra.gmra.mxu3 %v2169_v61  ;;  %841 = vmatpush.msra.mxu1 %v1869_v21 }
 0x1b8   :  { %916 = vmatpush.msra.mxu2 %v2176_v15  ;;  %936 = vmatpush.msra.mxu3 %v1859_v13  ;;  %v2196_v13 = vld [vmem:[#allocation12 + $0x108] sm:$0xff] }
 0x1b9   :  { %842 = vmatpush.msra.mxu1 %v1883_v27 }
 0x1ba   :  { %917 = vmatpush.msra.mxu2 %v2181_v63  ;;  %937 = vmatpush.msra.mxu3 %v1864_v17 }
 0x1bb   :  { %843 = vmatpush.msra.mxu1 %v1894_v31 }
 0x1bc   :  { %918 = vmatpush.msra.mxu2 %v2186_v28  ;;  %938 = vmatpush.msra.mxu3 %v1872_v22 }
 0x1bd   :  { %844 = vmatpush.msra.mxu1 %v1902_v34 }
 0x1be   :  { %919 = vmatpush.msra.mxu2 %v2191_v29  ;;  %939 = vmatpush.msra.mxu3 %v1877_v23 }
 0x1bf   :  { %845 = vmatpush.msra.mxu1 %v1909_v36 }
 0x1c0   :  { %920 = vmatpush.msra.mxu2 %v2196_v13  ;;  %940 = vmatpush.msra.mxu3 %v1891_v30 }
 0x1c1   :  { %846 = vmatpush.msra.mxu1 %v1917_v39 }
 0x1c2   :  { %921 = vmatpush.msra.mxu2 %v2201_v51  ;;  %941 = vmatpush.msra.mxu3 %v1897_v33 }
 0x1c3   :  { %847 = vmatpush.msra.mxu1 %v1925_v41 }
 0x1c4   :  { %922 = vmatpush.msra.mxu2 %v1830_v32  ;;  %942 = vmatpush.msra.mxu3 %v1904_v35  ;;  %v2497_v32 = vld [vmem:[#allocation32_spill] sm:$0xff] }
 0x1c5   :  { %848 = vmatpush.msra.mxu1 %v1933_v44 }
 0x1c6   :  { %923 = vmatpush.msra.mxu2 %v1833_v38  ;;  %943 = vmatpush.msra.mxu3 %v1912_v37  ;;  %v2498_v38 = vld [vmem:[#allocation27_spill] sm:$0xff] }
 0x1c7   :  { %849 = vmatpush.msra.mxu1 %v1941_v46 }
 0x1c8   :  { %924 = vmatpush.msra.mxu2 %v1836_v42  ;;  %944 = vmatpush.msra.mxu3 %v1920_v40  ;;  %v2499_v42 = vld [vmem:[#allocation30_spill] sm:$0xff] }
 0x1c9   :  { %850 = vmatpush.msra.mxu1 %v1949_v48 }
 0x1ca   :  { %925 = vmatpush.msra.mxu2 %v1843_v53  ;;  %945 = vmatpush.msra.mxu3 %v1928_v43 }
 0x1cb   :  { %851 = vmatpush.msra.mxu1 %v1957_v50 }
 0x1cc   :  { %926 = vmatpush.msra.mxu2 %v1849_v60  ;;  %946 = vmatpush.msra.mxu3 %v1936_v45  ;;  %v2500_v60 = vld [vmem:[#allocation33_spill] sm:$0xff] }
 0x1cd   :  { %852 = vmatpush.msra.mxu1 %v1965_v52 }
 0x1ce   :  { %927 = vmatpush.msra.mxu2 %v1853_v3  ;;  %947 = vmatpush.msra.mxu3 %v1944_v47 }
 0x1cf   :  { %853 = vmatpush.msra.mxu1 %v1973_v55 }
 0x1d0   :  { %928 = vmatpush.msra.mxu2 %v1856_v8  ;;  %948 = vmatpush.msra.mxu3 %v1952_v49  ;;  %v570_v8 = vld [vmem:[#allocation3 + $0x2] ss:$8 sm:$0x7] }
 0x1d1   :  { %854 = vmatpush.msra.mxu1 %v1981_v57  ;;  %v652_v6 = vrot.slane %v570_v8, 1 }
 0x1d2   :  { %929 = vmatpush.msra.mxu2 %v2487_v10  ;;  %949 = vmatpush.msra.mxu3 %v2488_v12 }
 0x1d3   :  { %855 = vmatpush.msra.mxu1 %v2489_v16 }
 0x1d4   :  { %930 = vmatpush.msra.mxu2 %v2490_v20  ;;  %950 = vmatpush.msra.mxu3 %v2491_v24 }
 0x1d5   :  { %856 = vmatpush.msra.mxu1 %v2497_v32 }
 0x1d6   :  { %931 = vmatpush.msra.mxu2 %v2498_v38  ;;  %951 = vmatpush.msra.mxu3 %v2499_v42 }
 0x233   :  { %v588_v53 = vpop.f32.mrf.mxu1 }
 0x234   :  { %v589_v3 = vadd.f32 %v588_v53, %v2500_v60 }
 0x236   :  { %v631_v11 = vadd.f32 %v589_v3, %v570_v8 }
 0x238   :  { %v1368_v10 = vmul.f32 -1.442695, %v631_v11 }
 0x239   :  { %v608_v5 = vpop.f32.mrf.mxu2 }
 0x23a   :  { %1413 = vpow2.f32 %v1368_v10  ;;  %v609_v7 = vadd.f32 %v608_v5, %v2501_v4  ;;  %v628_v19 = vpop.f32.mrf.mxu3 }
 0x23b   :  { %v629_v10 = vadd.f32 %v628_v19, %v2107_v14 }
 0x23c   :  { %v654_v20 = vadd.f32 %v652_v6, %v609_v7  ;;  %v675_v6 = vrot.slane %v570_v8, 2 }
 0x23e   :  { %v1369_v9 = vmul.f32 -1.442695, %v654_v20 }
 0x240   :  { %v1414_v18 = vpop.eup %1413  ;;  %1415 = vpow2.f32 %v1369_v9 }
 0x241   :  { %v635_v1 = vadd.f32 1.0, %v1414_v18 }
 0x243   :  { %1417 = vrcp.f32 %v635_v1  ;;  %v647_v26 = vand.u32 2147483648, %v635_v1  ;;  %v645_v59 = vand.u32 2147483647, %v635_v1  ;;  %vm641_vm1 = vweird.f32 %v635_v1 }
 0x245   :  { %v648_v3 = vor.u32 1.1754944e-38, %v647_v26  ;;  %vm646_vm3 = vcmp.eq.f32.partialorder %v645_v59, 8.507059e+37 }
 0x246   :  { %v1416_v54 = vpop.eup %1415 }
 0x247   :  { %v658_v62 = vadd.f32 1.0, %v1416_v54 }
 0x249   :  { %v1418_v25 = vpop.eup %1417  ;;  %1419 = vrcp.f32 %v658_v62  ;;  %v670_v9 = vand.u32 2147483648, %v658_v62  ;;  %v668_v54 = vand.u32 2147483647, %v658_v62  ;;  %vm664_vm5 = vweird.f32 %v658_v62 }
 0x24a   :  { %v637_v58 = vmul.f32 %v1418_v25, %v635_v1  ;;  %vm642_vm0 = vweird.f32 %v1418_v25 }
 0x24b   :  { %vm643_vm2 = vmor %vm641_vm1, %vm642_vm0  ;;  %vm669_vm7 = vcmp.eq.f32.partialorder %v668_v54, 8.507059e+37 }
 0x24c   :  { %v638_v0 = vsub.f32 1.0, %v637_v58 }
 0x24e   :  { %v639_v56 = vmul.f32 %v1418_v25, %v638_v0 }
 0x24f   :  { %v1420_v2 = vpop.eup %1419 }
 0x250   :  { %v660_v38 = vmul.f32 %v1420_v2, %v658_v62  ;;  %v640_v53 = vadd.f32 %v1418_v25, %v639_v56  ;;  %vm665_vm4 = vweird.f32 %v1420_v2  ;;  %v671_v56 = vor.u32 1.1754944e-38, %v670_v9  ;;  %v2247_v62 = vld [vmem:[#allocation12 + $0x170] sm:$0xff] }
 0x251   :  { %vm666_vm6 = vmor %vm664_vm5, %vm665_vm4 }
 0x252   :  { %v661_v11 = vsub.f32 1.0, %v660_v38  ;;  %v644_v5 = vsel %vm643_vm2, %v1418_v25, %v640_v53 }
 0x253   :  { %v649_v7 = vsel %vm646_vm3, %v648_v3, %v644_v5 }
 0x254   :  { %v662_v20 = vmul.f32 %v1420_v2, %v661_v11  ;;  %v674_v18 = vmul.f32 %v649_v7, %v629_v10 }
 0x256   :  { %v663_v58 = vadd.f32 %v1420_v2, %v662_v20  ;;  %v677_v0 = vadd.f32 %v675_v6, %v674_v18 }
 0x258   :  { %v667_v1 = vsel %vm666_vm6, %v1420_v2, %v663_v58  ;;  %1421 = vtanh.f32 %v677_v0 }
 0x259   :  { %v672_v26 = vsel %vm669_vm7, %v671_v56, %v667_v1 }
 0x25a   :  { %v679_v38 = vsub.f32 1.0, %v672_v26  ;;  %v681_v59 = vmul.f32 %v672_v26, %v2169_v61 }
 0x25e   :  { %v1422_v19 = vpop.eup %1421 }
 0x25f   :  { %v680_v25 = vmul.f32 %v1422_v19, %v679_v38 }
 0x261   :  { %v2239_v8 = vadd.f32 %v681_v59, %v680_v25 }
 0x263   :  { %683 = vst [vmem:[#allocation4 + $0x2] sm:$0x1] %v2239_v8  ;;  %702 = vmatmul.f32.vlgmr.msrb.gmra.mxu0 %v2239_v8  ;;  %722 = vmatmul.f32.vlgmr.msrb.gmra.mxu1 %v2239_v8 }
 0x264   :  { %742 = vmatmul.f32.vlgmr.msrb.gmra.mxu2 %v2239_v8  ;;  %956 = vmatpush.msrb.mxu0 %v1869_v21  ;;  %v2271_v21 = vld [vmem:[#allocation12 + $0xc0] sm:$0xff] }
 0x265   :  { %1031 = vmatpush.msrb.mxu1 %v2176_v15  ;;  %1051 = vmatpush.msrb.mxu2 %v2247_v62 }
 0x266   :  { %957 = vmatpush.msrb.mxu0 %v1883_v27  ;;  %v2286_v27 = vld [vmem:[#allocation12 + $0x78] sm:$0xff] }
 0x267   :  { %1032 = vmatpush.msrb.mxu1 %v2181_v63  ;;  %1052 = vmatpush.msrb.mxu2 %v1864_v17  ;;  %v2266_v17 = vld [vmem:[#allocation12 + $0xd8] sm:$0xff] }
 0x268   :  { %958 = vmatpush.msrb.mxu0 %v1894_v31  ;;  %v2296_v31 = vld [vmem:[#allocation12 + $0x48] sm:$0xff] }
 0x269   :  { %1033 = vmatpush.msrb.mxu1 %v2186_v28  ;;  %1053 = vmatpush.msrb.mxu2 %v1872_v22  ;;  %v2276_v22 = vld [vmem:[#allocation12 + $0xa8] sm:$0xff] }
 0x26a   :  { %959 = vmatpush.msrb.mxu0 %v1902_v34  ;;  %v2306_v34 = vld [vmem:[#allocation12 + $0x18] sm:$0xff] }
 0x26b   :  { %1034 = vmatpush.msrb.mxu1 %v2191_v29  ;;  %1054 = vmatpush.msrb.mxu2 %v1877_v23  ;;  %v2281_v23 = vld [vmem:[#allocation12 + $0x90] sm:$0xff] }
 0x26c   :  { %960 = vmatpush.msrb.mxu0 %v1909_v36  ;;  %v685_v36 = vld [vmem:[#allocation3 + $0x3] ss:$8 sm:$0x7] }
 0x26d   :  { %1035 = vmatpush.msrb.mxu1 %v2196_v13  ;;  %1055 = vmatpush.msrb.mxu2 %v1891_v30  ;;  %v2291_v30 = vld [vmem:[#allocation12 + $0x60] sm:$0xff]  ;;  %v790_v54 = vrot.slane %v685_v36, 2 }
 0x26e   :  { %961 = vmatpush.msrb.mxu0 %v1917_v39 }
 0x26f   :  { %1036 = vmatpush.msrb.mxu1 %v2201_v51  ;;  %1056 = vmatpush.msrb.mxu2 %v1897_v33  ;;  %v2301_v33 = vld [vmem:[#allocation12 + $0x30] sm:$0xff] }
 0x270   :  { %962 = vmatpush.msrb.mxu0 %v1925_v41 }
 0x271   :  { %1037 = vmatpush.msrb.mxu1 %v2266_v17  ;;  %1057 = vmatpush.msrb.mxu2 %v1904_v35  ;;  %v2311_v35 = vld [vmem:[#allocation12] sm:$0xff] }
 0x272   :  { %963 = vmatpush.msrb.mxu0 %v1933_v44 }
 0x273   :  { %1038 = vmatpush.msrb.mxu1 %v2271_v21  ;;  %1058 = vmatpush.msrb.mxu2 %v1912_v37 }
 0x274   :  { %964 = vmatpush.msrb.mxu0 %v1941_v46 }
 0x275   :  { %1039 = vmatpush.msrb.mxu1 %v2276_v22  ;;  %1059 = vmatpush.msrb.mxu2 %v1920_v40 }
 0x276   :  { %965 = vmatpush.msrb.mxu0 %v1949_v48 }
 0x277   :  { %1040 = vmatpush.msrb.mxu1 %v2281_v23  ;;  %1060 = vmatpush.msrb.mxu2 %v1928_v43  ;;  %v767_v43 = vrot.slane %v685_v36, 1 }
 0x278   :  { %966 = vmatpush.msrb.mxu0 %v1957_v50 }
 0x279   :  { %1041 = vmatpush.msrb.mxu1 %v2286_v27  ;;  %1061 = vmatpush.msrb.mxu2 %v1936_v45 }
 0x27a   :  { %967 = vmatpush.msrb.mxu0 %v1965_v52 }
 0x27b   :  { %1042 = vmatpush.msrb.mxu1 %v2291_v30  ;;  %1062 = vmatpush.msrb.mxu2 %v1944_v47 }
 0x27c   :  { %968 = vmatpush.msrb.mxu0 %v1973_v55 }
 0x27d   :  { %1043 = vmatpush.msrb.mxu1 %v2296_v31  ;;  %1063 = vmatpush.msrb.mxu2 %v1952_v49 }
 0x27e   :  { %969 = vmatpush.msrb.mxu0 %v1981_v57 }
 0x27f   :  { %1044 = vmatpush.msrb.mxu1 %v2301_v33  ;;  %1064 = vmatpush.msrb.mxu2 %v2488_v12 }
 0x280   :  { %970 = vmatpush.msrb.mxu0 %v2489_v16 }
 0x281   :  { %1045 = vmatpush.msrb.mxu1 %v2306_v34  ;;  %1065 = vmatpush.msrb.mxu2 %v2491_v24 }
 0x282   :  { %971 = vmatpush.msrb.mxu0 %v2497_v32 }
 0x283   :  { %1046 = vmatpush.msrb.mxu1 %v2311_v35  ;;  %1066 = vmatpush.msrb.mxu2 %v2499_v42 }
 0x2e0   :  { %v703_v37 = vpop.f32.mrf.mxu0  ;;  %v723_v39 = vpop.f32.mrf.mxu1 }
 0x2e1   :  { %v704_v40 = vadd.f32 %v703_v37, %v2500_v60  ;;  %v724_v41 = vadd.f32 %v723_v39, %v2501_v4  ;;  %v2330_v39 = vld [vmem:[#allocation12 + $0x160] sm:$0xff] }
 0x2e3   :  { %v746_v44 = vadd.f32 %v704_v40, %v685_v36  ;;  %v769_v45 = vadd.f32 %v767_v43, %v724_v41  ;;  %v2325_v36 = vld [vmem:[#allocation12 + $0x178] sm:$0xff]  ;;  %v2334_v40 = vld [vmem:[#allocation12 + $0x148] sm:$0xff]  ;;  %v1498_v41 = vld [vmem:[#allocation12 + $0x140] sm:$0xff] }
 0x2e4   :  { %v2338_v43 = vld [vmem:[#allocation12 + $0x130] sm:$0xff] }
 0x2e5   :  { %v1370_v46 = vmul.f32 -1.442695, %v746_v44  ;;  %v1371_v47 = vmul.f32 -1.442695, %v769_v45  ;;  %v2346_v44 = vld [vmem:[#allocation12 + $0x100] sm:$0xff]  ;;  %v2350_v45 = vld [vmem:[#allocation12 + $0xe8] sm:$0xff] }
 0x2e7   :  { %1423 = vpow2.f32 %v1370_v46  ;;  %v743_v3 = vpop.f32.mrf.mxu2  ;;  %v2354_v46 = vld [vmem:[#allocation12 + $0xd0] sm:$0xff] }
 0x2e8   :  { %1425 = vpow2.f32 %v1371_v47  ;;  %v744_v5 = vadd.f32 %v743_v3, %v2107_v14  ;;  %v2358_v47 = vld [vmem:[#allocation12 + $0xb8] sm:$0xff] }
 0x2ed   :  { %v1424_v48 = vpop.eup %1423 }
 0x2ee   :  { %v1426_v49 = vpop.eup %1425  ;;  %v750_v50 = vadd.f32 1.0, %v1424_v48  ;;  %v2362_v48 = vld [vmem:[#allocation12 + $0xa0] sm:$0xff] }
 0x2ef   :  { %v773_v52 = vadd.f32 1.0, %v1426_v49  ;;  %v2366_v49 = vld [vmem:[#allocation12 + $0x88] sm:$0xff] }
 0x2f0   :  { %1427 = vrcp.f32 %v750_v50  ;;  %v762_v32 = vand.u32 2147483648, %v750_v50  ;;  %v760_v2 = vand.u32 2147483647, %v750_v50  ;;  %vm756_vm9 = vweird.f32 %v750_v50 }
 0x2f1   :  { %1429 = vrcp.f32 %v773_v52  ;;  %v785_v9 = vand.u32 2147483648, %v773_v52  ;;  %vm779_vm13 = vweird.f32 %v773_v52  ;;  %v783_v58 = vand.u32 2147483647, %v773_v52 }
 0x2f2   :  { %v763_v10 = vor.u32 1.1754944e-38, %v762_v32  ;;  %vm761_vm11 = vcmp.eq.f32.partialorder %v760_v2, 8.507059e+37 }
 0x2f3   :  { %v786_v1 = vor.u32 1.1754944e-38, %v785_v9  ;;  %vm784_vm15 = vcmp.eq.f32.partialorder %v783_v58, 8.507059e+37 }
 0x2f6   :  { %v1428_v55 = vpop.eup %1427 }
 0x2f7   :  { %v1430_v57 = vpop.eup %1429  ;;  %v752_v12 = vmul.f32 %v1428_v55, %v750_v50  ;;  %vm757_vm8 = vweird.f32 %v1428_v55  ;;  %v2370_v50 = vld [vmem:[#allocation12 + $0x70] sm:$0xff] }
 0x2f8   :  { %v775_v16 = vmul.f32 %v1430_v57, %v773_v52  ;;  %vm758_vm10 = vmor %vm756_vm9, %vm757_vm8  ;;  %vm780_vm12 = vweird.f32 %v1430_v57  ;;  %v2374_v52 = vld [vmem:[#allocation12 + $0x58] sm:$0xff] }
 0x2f9   :  { %v753_v24 = vsub.f32 1.0, %v752_v12  ;;  %vm781_vm14 = vmor %vm779_vm13, %vm780_vm12  ;;  %v2386_v12 = vld [vmem:[#allocation12 + $0x10] sm:$0xff] }
 0x2fa   :  { %v776_v61 = vsub.f32 1.0, %v775_v16  ;;  %v800_v16 = vld [vmem:[#allocation3 + $0x4] ss:$8 sm:$0x7] }
 0x2fb   :  { %v754_v42 = vmul.f32 %v1428_v55, %v753_v24 }
 0x2fc   :  { %v777_v53 = vmul.f32 %v1430_v57, %v776_v61  ;;  %v882_v61 = vrot.slane %v800_v16, 1 }
 0x2fd   :  { %v755_v11 = vadd.f32 %v1428_v55, %v754_v42 }
 0x2fe   :  { %v778_v20 = vadd.f32 %v1430_v57, %v777_v53 }
 0x2ff   :  { %v759_v7 = vsel %vm758_vm10, %v1428_v55, %v755_v11  ;;  %v2378_v55 = vld [vmem:[#allocation12 + $0x40] sm:$0xff] }
 0x300   :  { %v764_v6 = vsel %vm761_vm11, %v763_v10, %v759_v7  ;;  %v782_v56 = vsel %vm781_vm14, %v1430_v57, %v778_v20  ;;  %v2382_v57 = vld [vmem:[#allocation12 + $0x28] sm:$0xff] }
 0x301   :  { %v789_v18 = vmul.f32 %v764_v6, %v744_v5  ;;  %v787_v26 = vsel %vm784_vm15, %v786_v1, %v782_v56 }
 0x302   :  { %v794_v38 = vsub.f32 1.0, %v787_v26  ;;  %v796_v59 = vmul.f32 %v787_v26, %v2239_v8  ;;  %v1496_v8 = vld [vmem:[#allocation12 + $0x158] sm:$0xff] }
 0x303   :  { %v792_v0 = vadd.f32 %v790_v54, %v789_v18 }
 0x305   :  { %1431 = vtanh.f32 %v792_v0 }
 0x30b   :  { %v1432_v19 = vpop.eup %1431 }
 0x30c   :  { %v795_v25 = vmul.f32 %v1432_v19, %v794_v38 }
 0x30e   :  { %v2319_v37 = vadd.f32 %v796_v59, %v795_v25 }
 0x310   :  { %798 = vst [vmem:[#allocation4 + $0x3] sm:$0x1] %v2319_v37  ;;  %817 = vmatmul.f32.vlgmr.msrb.gmra.mxu3 %v2319_v37  ;;  %837 = vmatmul.f32.vlgmr.msra.gmra.mxu0 %v2319_v37 }
 0x311   :  { %857 = vmatmul.f32.vlgmr.msra.gmra.mxu1 %v2319_v37  ;;  %1071 = vmatpush.msrb.mxu3 %v2325_v36 }
 0x312   :  { %1146 = vmatpush.msra.mxu0 %v2176_v15  ;;  %1166 = vmatpush.msra.mxu1 %v2247_v62  ;;  %v1500_v15 = vld [vmem:[#allocation12 + $0x128] sm:$0xff]  ;;  %v2342_v62 = vld [vmem:[#allocation12 + $0x118] sm:$0xff] }
 0x313   :  { %1072 = vmatpush.msrb.mxu3 %v2330_v39 }
 0x314   :  { %1147 = vmatpush.msra.mxu0 %v2181_v63  ;;  %1167 = vmatpush.msra.mxu1 %v1496_v8  ;;  %v1502_v63 = vld [vmem:[#allocation12 + $0x110] sm:$0xff] }
 0x315   :  { %1073 = vmatpush.msrb.mxu3 %v2334_v40 }
 0x316   :  { %1148 = vmatpush.msra.mxu0 %v2186_v28  ;;  %1168 = vmatpush.msra.mxu1 %v1498_v41  ;;  %v1504_v28 = vld [vmem:[#allocation12 + $0xf8] sm:$0xff] }
 0x317   :  { %1074 = vmatpush.msrb.mxu3 %v2338_v43 }
 0x318   :  { %1149 = vmatpush.msra.mxu0 %v2191_v29  ;;  %1169 = vmatpush.msra.mxu1 %v1500_v15  ;;  %v1506_v29 = vld [vmem:[#allocation12 + $0xe0] sm:$0xff] }
 0x319   :  { %1075 = vmatpush.msrb.mxu3 %v2342_v62 }
 0x31a   :  { %1150 = vmatpush.msra.mxu0 %v2196_v13  ;;  %1170 = vmatpush.msra.mxu1 %v1502_v63  ;;  %v1508_v13 = vld [vmem:[#allocation12 + $0xc8] sm:$0xff]  ;;  %v905_v63 = vrot.slane %v800_v16, 2 }
 0x31b   :  { %1076 = vmatpush.msrb.mxu3 %v2346_v44 }
 0x31c   :  { %1151 = vmatpush.msra.mxu0 %v2201_v51  ;;  %1171 = vmatpush.msra.mxu1 %v1504_v28  ;;  %v1510_v51 = vld [vmem:[#allocation12 + $0xb0] sm:$0xff] }
 0x31d   :  { %1077 = vmatpush.msrb.mxu3 %v2350_v45 }
 0x31e   :  { %1152 = vmatpush.msra.mxu0 %v2266_v17  ;;  %1172 = vmatpush.msra.mxu1 %v1506_v29  ;;  %v1512_v17 = vld [vmem:[#allocation12 + $0x98] sm:$0xff] }
 0x31f   :  { %1078 = vmatpush.msrb.mxu3 %v2354_v46 }
 0x320   :  { %1153 = vmatpush.msra.mxu0 %v2271_v21  ;;  %1173 = vmatpush.msra.mxu1 %v1508_v13  ;;  %v1514_v21 = vld [vmem:[#allocation12 + $0x80] sm:$0xff] }
 0x321   :  { %1079 = vmatpush.msrb.mxu3 %v2358_v47 }
 0x322   :  { %1154 = vmatpush.msra.mxu0 %v2276_v22  ;;  %1174 = vmatpush.msra.mxu1 %v1510_v51  ;;  %v1516_v22 = vld [vmem:[#allocation12 + $0x68] sm:$0xff] }
 0x323   :  { %1080 = vmatpush.msrb.mxu3 %v2362_v48 }
 0x324   :  { %1155 = vmatpush.msra.mxu0 %v2281_v23  ;;  %1175 = vmatpush.msra.mxu1 %v1512_v17  ;;  %v1518_v23 = vld [vmem:[#allocation12 + $0x50] sm:$0xff] }
 0x325   :  { %1081 = vmatpush.msrb.mxu3 %v2366_v49 }
 0x326   :  { %1156 = vmatpush.msra.mxu0 %v2286_v27  ;;  %1176 = vmatpush.msra.mxu1 %v1514_v21  ;;  %v1520_v27 = vld [vmem:[#allocation12 + $0x38] sm:$0xff] }
 0x327   :  { %1082 = vmatpush.msrb.mxu3 %v2370_v50 }
 0x328   :  { %1157 = vmatpush.msra.mxu0 %v2291_v30  ;;  %1177 = vmatpush.msra.mxu1 %v1516_v22  ;;  %v1522_v30 = vld [vmem:[#allocation12 + $0x20] sm:$0xff] }
 0x329   :  { %1083 = vmatpush.msrb.mxu3 %v2374_v52 }
 0x32a   :  { %1158 = vmatpush.msra.mxu0 %v2296_v31  ;;  %1178 = vmatpush.msra.mxu1 %v1518_v23  ;;  %v1524_v31 = vld [vmem:[#allocation12 + $0x8] sm:$0xff] }
 0x32b   :  { %1084 = vmatpush.msrb.mxu3 %v2378_v55 }
 0x32c   :  { %1159 = vmatpush.msra.mxu0 %v2301_v33  ;;  %1179 = vmatpush.msra.mxu1 %v1520_v27 }
 0x32d   :  { %1085 = vmatpush.msrb.mxu3 %v2382_v57 }
 0x32e   :  { %1160 = vmatpush.msra.mxu0 %v2306_v34  ;;  %1180 = vmatpush.msra.mxu1 %v1522_v30 }
 0x32f   :  { %1086 = vmatpush.msrb.mxu3 %v2386_v12 }
 0x330   :  { %1161 = vmatpush.msra.mxu0 %v2311_v35  ;;  %1181 = vmatpush.msra.mxu1 %v1524_v31 }
 0x38d   :  { %v838_v33 = vpop.f32.mrf.mxu0 }
 0x38e   :  { %v839_v24 = vadd.f32 %v838_v33, %v2501_v4  ;;  %v858_v26 = vpop.f32.mrf.mxu1 }
 0x38f   :  { %v859_v25 = vadd.f32 %v858_v26, %v2107_v14 }
 0x390   :  { %v884_v32 = vadd.f32 %v882_v61, %v839_v24 }
 0x392   :  { %v1373_v42 = vmul.f32 -1.442695, %v884_v32 }
 0x393   :  { %v818_v2 = vpop.f32.mrf.mxu3 }
 0x394   :  { %1433 = vpow2.f32 %v1373_v42  ;;  %v819_v34 = vadd.f32 %v818_v2, %v2500_v60 }
 0x396   :  { %v861_v53 = vadd.f32 %v819_v34, %v800_v16 }
 0x398   :  { %v1372_v3 = vmul.f32 -1.442695, %v861_v53 }
 0x39a   :  { %v1434_v11 = vpop.eup %1433  ;;  %1435 = vpow2.f32 %v1372_v3 }
 0x39b   :  { %v888_v10 = vadd.f32 1.0, %v1434_v11 }
 0x39d   :  { %1437 = vrcp.f32 %v888_v10  ;;  %v900_v15 = vand.u32 2147483648, %v888_v10  ;;  %vm894_vm5 = vweird.f32 %v888_v10  ;;  %v898_v29 = vand.u32 2147483647, %v888_v10 }
 0x39f   :  { %v901_v17 = vor.u32 1.1754944e-38, %v900_v15  ;;  %vm899_vm7 = vcmp.eq.f32.partialorder %v898_v29, 8.507059e+37 }
 0x3a0   :  { %v1436_v35 = vpop.eup %1435 }
 0x3a1   :  { %v865_v5 = vadd.f32 1.0, %v1436_v35 }
 0x3a3   :  { %1439 = vrcp.f32 %v865_v5  ;;  %v1438_v7 = vpop.eup %1437  ;;  %v877_v58 = vand.u32 2147483648, %v865_v5  ;;  %v875_v56 = vand.u32 2147483647, %v865_v5  ;;  %vm871_vm1 = vweird.f32 %v865_v5 }
 0x3a4   :  { %v890_v6 = vmul.f32 %v1438_v7, %v888_v10  ;;  %vm895_vm4 = vweird.f32 %v1438_v7 }
 0x3a5   :  { %v878_v19 = vor.u32 1.1754944e-38, %v877_v58  ;;  %vm876_vm3 = vcmp.eq.f32.partialorder %v875_v56, 8.507059e+37  ;;  %vm896_vm6 = vmor %vm894_vm5, %vm895_vm4 }
 0x3a6   :  { %v891_v18 = vsub.f32 1.0, %v890_v6 }
 0x3a8   :  { %v892_v1 = vmul.f32 %v1438_v7, %v891_v18 }
 0x3a9   :  { %v1440_v20 = vpop.eup %1439 }
 0x3aa   :  { %v867_v9 = vmul.f32 %v1440_v20, %v865_v5  ;;  %vm872_vm0 = vweird.f32 %v1440_v20  ;;  %v893_v41 = vadd.f32 %v1438_v7, %v892_v1 }
 0x3ab   :  { %vm873_vm2 = vmor %vm871_vm1, %vm872_vm0 }
 0x3ac   :  { %v868_v54 = vsub.f32 1.0, %v867_v9  ;;  %v897_v51 = vsel %vm896_vm6, %v1438_v7, %v893_v41 }
 0x3ad   :  { %v902_v21 = vsel %vm899_vm7, %v901_v17, %v897_v51 }
 0x3ae   :  { %v869_v0 = vmul.f32 %v1440_v20, %v868_v54  ;;  %v909_v22 = vsub.f32 1.0, %v902_v21  ;;  %v911_v30 = vmul.f32 %v902_v21, %v2319_v37  ;;  %v915_v37 = vld [vmem:[#allocation3 + $0x5] ss:$8 sm:$0x7] }
 0x3af   :  { %v1020_v6 = vrot.slane %v915_v37, 2 }
 0x3b0   :  { %v870_v38 = vadd.f32 %v1440_v20, %v869_v0 }
 0x3b2   :  { %v874_v59 = vsel %vm873_vm2, %v1440_v20, %v870_v38 }
 0x3b3   :  { %v879_v8 = vsel %vm876_vm3, %v878_v19, %v874_v59 }
 0x3b4   :  { %v904_v28 = vmul.f32 %v879_v8, %v859_v25  ;;  %v1030_v8 = vld [vmem:[#allocation3 + $0x6] ss:$8 sm:$0x7] }
 0x3b5   :  { %v1112_v29 = vrot.slane %v1030_v8, 1 }
 0x3b6   :  { %v907_v13 = vadd.f32 %v905_v63, %v904_v28 }
 0x3b8   :  { %1441 = vtanh.f32 %v907_v13 }
 0x3be   :  { %v1442_v23 = vpop.eup %1441 }
 0x3bf   :  { %v910_v27 = vmul.f32 %v1442_v23, %v909_v22 }
 0x3c1   :  { %v2394_v31 = vadd.f32 %v911_v30, %v910_v27 }
 0x3c3   :  { %913 = vst [vmem:[#allocation4 + $0x4] sm:$0x1] %v2394_v31  ;;  %932 = vmatmul.f32.vlgmr.msra.gmra.mxu2 %v2394_v31  ;;  %952 = vmatmul.f32.vlgmr.msra.gmra.mxu3 %v2394_v31 }
 0x3c4   :  { %972 = vmatmul.f32.vlgmr.msrb.gmra.mxu0 %v2394_v31  ;;  %1186 = vmatpush.msra.mxu2 %v2325_v36 }
 0x3c6   :  { %1187 = vmatpush.msra.mxu2 %v2330_v39 }
 0x3c8   :  { %1188 = vmatpush.msra.mxu2 %v2334_v40 }
 0x3ca   :  { %1189 = vmatpush.msra.mxu2 %v2338_v43 }
 0x3cc   :  { %1190 = vmatpush.msra.mxu2 %v2342_v62  ;;  %v997_v62 = vrot.slane %v915_v37, 1 }
 0x3ce   :  { %1191 = vmatpush.msra.mxu2 %v2346_v44 }
 0x3d0   :  { %1192 = vmatpush.msra.mxu2 %v2350_v45 }
 0x3d2   :  { %1193 = vmatpush.msra.mxu2 %v2354_v46 }
 0x3d4   :  { %1194 = vmatpush.msra.mxu2 %v2358_v47 }
 0x3d6   :  { %1195 = vmatpush.msra.mxu2 %v2362_v48 }
 0x3d8   :  { %1196 = vmatpush.msra.mxu2 %v2366_v49 }
 0x3da   :  { %1197 = vmatpush.msra.mxu2 %v2370_v50 }
 0x3dc   :  { %1198 = vmatpush.msra.mxu2 %v2374_v52 }
 0x3de   :  { %1199 = vmatpush.msra.mxu2 %v2378_v55 }
 0x3e0   :  { %1200 = vmatpush.msra.mxu2 %v2382_v57 }
 0x3e2   :  { %1201 = vmatpush.msra.mxu2 %v2386_v12 }
 0x441   :  { %v973_v2 = vpop.f32.mrf.mxu0 }
 0x442   :  { %v974_v11 = vadd.f32 %v973_v2, %v2107_v14 }
 0x446   :  { %v933_v36 = vpop.f32.mrf.mxu2  ;;  %v953_v39 = vpop.f32.mrf.mxu3 }
 0x447   :  { %v934_v40 = vadd.f32 %v933_v36, %v2500_v60  ;;  %v954_v43 = vadd.f32 %v953_v39, %v2501_v4 }
 0x449   :  { %v976_v44 = vadd.f32 %v934_v40, %v915_v37  ;;  %v999_v45 = vadd.f32 %v997_v62, %v954_v43 }
 0x44b   :  { %v1374_v46 = vmul.f32 -1.442695, %v976_v44  ;;  %v1375_v47 = vmul.f32 -1.442695, %v999_v45 }
 0x44d   :  { %1443 = vpow2.f32 %v1374_v46 }
 0x44e   :  { %1445 = vpow2.f32 %v1375_v47 }
 0x453   :  { %v1444_v48 = vpop.eup %1443 }
 0x454   :  { %v1446_v49 = vpop.eup %1445  ;;  %v980_v50 = vadd.f32 1.0, %v1444_v48 }
 0x455   :  { %v1003_v52 = vadd.f32 1.0, %v1446_v49 }
 0x456   :  { %1447 = vrcp.f32 %v980_v50  ;;  %v992_v24 = vand.u32 2147483648, %v980_v50  ;;  %v990_v42 = vand.u32 2147483647, %v980_v50  ;;  %vm986_vm9 = vweird.f32 %v980_v50 }
 0x457   :  { %1449 = vrcp.f32 %v1003_v52  ;;  %v1015_v20 = vand.u32 2147483648, %v1003_v52  ;;  %vm1009_vm13 = vweird.f32 %v1003_v52  ;;  %v1013_v9 = vand.u32 2147483647, %v1003_v52 }
 0x458   :  { %v993_v3 = vor.u32 1.1754944e-38, %v992_v24  ;;  %vm991_vm11 = vcmp.eq.f32.partialorder %v990_v42, 8.507059e+37 }
 0x459   :  { %v1016_v58 = vor.u32 1.1754944e-38, %v1015_v20  ;;  %vm1014_vm15 = vcmp.eq.f32.partialorder %v1013_v9, 8.507059e+37 }
 0x45c   :  { %v1448_v55 = vpop.eup %1447 }
 0x45d   :  { %v1450_v57 = vpop.eup %1449  ;;  %v982_v12 = vmul.f32 %v1448_v55, %v980_v50  ;;  %vm987_vm8 = vweird.f32 %v1448_v55  ;;  %v1135_v50 = vrot.slane %v1030_v8, 2 }
 0x45e   :  { %v1005_v16 = vmul.f32 %v1450_v57, %v1003_v52  ;;  %vm988_vm10 = vmor %vm986_vm9, %vm987_vm8  ;;  %vm1010_vm12 = vweird.f32 %v1450_v57 }
 0x45f   :  { %v983_v33 = vsub.f32 1.0, %v982_v12  ;;  %vm1011_vm14 = vmor %vm1009_vm13, %vm1010_vm12 }
 0x460   :  { %v1006_v61 = vsub.f32 1.0, %v1005_v16 }
 0x461   :  { %v984_v32 = vmul.f32 %v1448_v55, %v983_v33 }
 0x462   :  { %v1007_v34 = vmul.f32 %v1450_v57, %v1006_v61 }
 0x463   :  { %v985_v53 = vadd.f32 %v1448_v55, %v984_v32 }
 0x464   :  { %v1008_v5 = vadd.f32 %v1450_v57, %v1007_v34 }
 0x465   :  { %v989_v10 = vsel %vm988_vm10, %v1448_v55, %v985_v53 }
 0x466   :  { %v994_v35 = vsel %vm991_vm11, %v993_v3, %v989_v10  ;;  %v1012_v54 = vsel %vm1011_vm14, %v1450_v57, %v1008_v5  ;;  %v2429_v10 = vld [vmem:[#allocation3 + $0x7] ss:$8 sm:$0x7] }
 0x467   :  { %v1019_v7 = vmul.f32 %v994_v35, %v974_v11  ;;  %v1017_v0 = vsel %vm1014_vm15, %v1016_v58, %v1012_v54  ;;  %v1276_v11 = vld [vmem:[#allocation15 + $0x78] sm:$0xff]  ;;  %v1275_v35 = vld [vmem:[#allocation15 + $0x70] sm:$0xff]  ;;  %v1227_v9 = vrot.slane %v2429_v10, 1 }
 0x468   :  { %v1024_v56 = vsub.f32 1.0, %v1017_v0  ;;  %v1026_v38 = vmul.f32 %v1017_v0, %v2394_v31  ;;  %1281 = vmatpush.msra.mxu3 %v1276_v11  ;;  %v1273_v0 = vld [vmem:[#allocation15 + $0x60] sm:$0xff] }
 0x469   :  { %v1022_v18 = vadd.f32 %v1020_v6, %v1019_v7 }
 0x46a   :  { %1282 = vmatpush.msra.mxu3 %v1275_v35 }
 0x46b   :  { %1451 = vtanh.f32 %v1022_v18  ;;  %v1274_v18 = vld [vmem:[#allocation15 + $0x68] sm:$0xff] }
 0x46c   :  { %1283 = vmatpush.msra.mxu3 %v1274_v18 }
 0x46e   :  { %1284 = vmatpush.msra.mxu3 %v1273_v0 }
 0x471   :  { %v1452_v1 = vpop.eup %1451 }
 0x472   :  { %v1025_v26 = vmul.f32 %v1452_v1, %v1024_v56 }
 0x474   :  { %v1027_v19 = vadd.f32 %v1026_v38, %v1025_v26  ;;  %v1272_v26 = vld [vmem:[#allocation15 + $0x58] sm:$0xff]  ;;  %v1271_v38 = vld [vmem:[#allocation15 + $0x50] sm:$0xff] }
 0x475   :  { %1285 = vmatpush.msra.mxu3 %v1272_v26 }
 0x476   :  { %1028 = vst [vmem:[#allocation4 + $0x5] sm:$0x1] %v1027_v19  ;;  %1047 = vmatmul.f32.vlgmr.msrb.gmra.mxu1 %v1027_v19  ;;  %1067 = vmatmul.f32.vlgmr.msrb.gmra.mxu2 %v1027_v19 }
 0x477   :  { %1087 = vmatmul.f32.vlgmr.msrb.gmra.mxu3 %v1027_v19 }
 0x478   :  { %1286 = vmatpush.msra.mxu3 %v1271_v38 }
 0x4f3   :  { %v1048_v25 = vpop.f32.mrf.mxu1 }
 0x4f4   :  { %v1049_v59 = vadd.f32 %v1048_v25, %v2500_v60  ;;  %v1268_v25 = vld [vmem:[#allocation15 + $0x38] sm:$0xff] }
 0x4f6   :  { %v1091_v41 = vadd.f32 %v1049_v59, %v1030_v8 }
 0x4f8   :  { %v1376_v15 = vmul.f32 -1.442695, %v1091_v41 }
 0x4f9   :  { %v1068_v63 = vpop.f32.mrf.mxu2 }
 0x4fa   :  { %1453 = vpow2.f32 %v1376_v15  ;;  %v1069_v28 = vadd.f32 %v1068_v63, %v2501_v4  ;;  %v1088_v43 = vpop.f32.mrf.mxu3  ;;  %v1267_v15 = vld [vmem:[#allocation15 + $0x30] sm:$0xff]  ;;  %v1266_v63 = vld [vmem:[#allocation15 + $0x28] sm:$0xff] }
 0x4fb   :  { %v1089_v47 = vadd.f32 %v1088_v43, %v2107_v14 }
 0x4fc   :  { %v1114_v13 = vadd.f32 %v1112_v29, %v1069_v28  ;;  %v1265_v28 = vld [vmem:[#allocation15 + $0x20] sm:$0xff]  ;;  %v1264_v29 = vld [vmem:[#allocation15 + $0x18] sm:$0xff] }
 0x4fe   :  { %v1377_v51 = vmul.f32 -1.442695, %v1114_v13  ;;  %v1263_v13 = vld [vmem:[#allocation15 + $0x10] sm:$0xff] }
 0x500   :  { %v1454_v17 = vpop.eup %1453  ;;  %1455 = vpow2.f32 %v1377_v51 }
 0x501   :  { %v1095_v21 = vadd.f32 1.0, %v1454_v17 }
 0x503   :  { %1457 = vrcp.f32 %v1095_v21  ;;  %v1107_v37 = vand.u32 2147483648, %v1095_v21  ;;  %v1105_v39 = vand.u32 2147483647, %v1095_v21  ;;  %vm1101_vm1 = vweird.f32 %v1095_v21 }
 0x505   :  { %v1108_v45 = vor.u32 1.1754944e-38, %v1107_v37  ;;  %vm1106_vm3 = vcmp.eq.f32.partialorder %v1105_v39, 8.507059e+37 }
 0x506   :  { %v1456_v22 = vpop.eup %1455 }
 0x507   :  { %v1118_v23 = vadd.f32 1.0, %v1456_v22  ;;  %v1262_v22 = vld [vmem:[#allocation15 + $0x8] sm:$0xff] }
 0x509   :  { %v1458_v27 = vpop.eup %1457  ;;  %1459 = vrcp.f32 %v1118_v23  ;;  %v1130_v55 = vand.u32 2147483648, %v1118_v23  ;;  %v1128_v12 = vand.u32 2147483647, %v1118_v23  ;;  %vm1124_vm5 = vweird.f32 %v1118_v23 }
 0x50a   :  { %v1097_v30 = vmul.f32 %v1458_v27, %v1095_v21  ;;  %vm1102_vm0 = vweird.f32 %v1458_v27 }
 0x50b   :  { %vm1103_vm2 = vmor %vm1101_vm1, %vm1102_vm0  ;;  %v1131_v24 = vor.u32 1.1754944e-38, %v1130_v55  ;;  %vm1129_vm7 = vcmp.eq.f32.partialorder %v1128_v12, 8.507059e+37 }
 0x50c   :  { %v1098_v31 = vsub.f32 1.0, %v1097_v30  ;;  %v1261_v30 = vld [vmem:[#allocation15] sm:$0xff] }
 0x50e   :  { %v1099_v36 = vmul.f32 %v1458_v27, %v1098_v31 }
 0x50f   :  { %v1460_v40 = vpop.eup %1459 }
 0x510   :  { %v1120_v62 = vmul.f32 %v1460_v40, %v1118_v23  ;;  %v1100_v44 = vadd.f32 %v1458_v27, %v1099_v36  ;;  %vm1125_vm4 = vweird.f32 %v1460_v40 }
 0x511   :  { %vm1126_vm6 = vmor %vm1124_vm5, %vm1125_vm4 }
 0x512   :  { %v1121_v46 = vsub.f32 1.0, %v1120_v62  ;;  %v1104_v48 = vsel %vm1103_vm2, %v1458_v27, %v1100_v44 }
 0x513   :  { %v1109_v49 = vsel %vm1106_vm3, %v1108_v45, %v1104_v48 }
 0x514   :  { %v1122_v52 = vmul.f32 %v1460_v40, %v1121_v46  ;;  %v1134_v57 = vmul.f32 %v1109_v49, %v1089_v47 }
 0x516   :  { %v1123_v16 = vadd.f32 %v1460_v40, %v1122_v52  ;;  %v1137_v33 = vadd.f32 %v1135_v50, %v1134_v57  ;;  %v1250_v52 = vrot.slane %v2429_v10, 2 }
 0x518   :  { %v1127_v61 = vsel %vm1126_vm6, %v1460_v40, %v1123_v16  ;;  %1461 = vtanh.f32 %v1137_v33 }
 0x519   :  { %v1132_v32 = vsel %vm1129_vm7, %v1131_v24, %v1127_v61 }
 0x51a   :  { %v1139_v42 = vsub.f32 1.0, %v1132_v32  ;;  %v1141_v53 = vmul.f32 %v1132_v32, %v1027_v19 }
 0x51e   :  { %v1462_v2 = vpop.eup %1461 }
 0x51f   :  { %v1140_v34 = vmul.f32 %v1462_v2, %v1139_v42 }
 0x521   :  { %v2423_v3 = vadd.f32 %v1141_v53, %v1140_v34  ;;  %v1392_v34 = vld [vmem:[%s2453_s6] ss:$0 sm:$0xff]  ;;  %s1728_s6 = smov [#allocation16]  }
 0x522   :  { %s1318_s1 = sshll.u32 %s1728_s6, 4  ;;  %s1319_s1 = int_to_ptr.vmem [resolvable:$true] %s1318_s1 }
 0x523   :  { %1143 = vst [vmem:[#allocation4 + $0x6] sm:$0x1] %v2423_v3  ;;  %1162 = vmatmul.f32.vlgmr.msra.gmra.mxu0 %v2423_v3  ;;  %1182 = vmatmul.f32.vlgmr.msra.gmra.mxu1 %v2423_v3 }
 0x524   :  { %1202 = vmatmul.f32.vlgmr.msra.gmra.mxu2 %v2423_v3 }
 0x5a0   :  { %v1163_v5 = vpop.f32.mrf.mxu0  ;;  %v1183_v7 = vpop.f32.mrf.mxu1 }
 0x5a1   :  { %v1164_v6 = vadd.f32 %v1163_v5, %v2500_v60  ;;  %v1184_v20 = vadd.f32 %v1183_v7, %v2501_v4  ;;  %v1270_v60 = vld [vmem:[#allocation15 + $0x48] sm:$0xff]  ;;  %v1269_v4 = vld [vmem:[#allocation15 + $0x40] sm:$0xff] }
 0x5a2   :  { %1287 = vmatpush.msra.mxu3 %v1270_v60 }
 0x5a3   :  { %v1206_v54 = vadd.f32 %v1164_v6, %v2429_v10  ;;  %v1229_v58 = vadd.f32 %v1227_v9, %v1184_v20 }
 0x5a4   :  { %1288 = vmatpush.msra.mxu3 %v1269_v4 }
 0x5a5   :  { %v1378_v56 = vmul.f32 -1.442695, %v1206_v54  ;;  %v1379_v1 = vmul.f32 -1.442695, %v1229_v58 }
 0x5a6   :  { %1289 = vmatpush.msra.mxu3 %v1268_v25 }
 0x5a7   :  { %1463 = vpow2.f32 %v1378_v56  ;;  %v1203_v43 = vpop.f32.mrf.mxu2 }
 0x5a8   :  { %1465 = vpow2.f32 %v1379_v1  ;;  %1290 = vmatpush.msra.mxu3 %v1267_v15  ;;  %v1204_v45 = vadd.f32 %v1203_v43, %v2107_v14 }
 0x5aa   :  { %1291 = vmatpush.msra.mxu3 %v1266_v63 }
 0x5ac   :  { %1292 = vmatpush.msra.mxu3 %v1265_v28 }
 0x5ad   :  { %v1464_v19 = vpop.eup %1463 }
 0x5ae   :  { %v1466_v59 = vpop.eup %1465  ;;  %v1210_v8 = vadd.f32 1.0, %v1464_v19  ;;  %1293 = vmatpush.msra.mxu3 %v1264_v29 }
 0x5af   :  { %v1233_v41 = vadd.f32 1.0, %v1466_v59 }
 0x5b0   :  { %1467 = vrcp.f32 %v1210_v8  ;;  %1294 = vmatpush.msra.mxu3 %v1263_v13  ;;  %v1222_v37 = vand.u32 2147483648, %v1210_v8  ;;  %v1220_v39 = vand.u32 2147483647, %v1210_v8  ;;  %vm1216_vm9 = vweird.f32 %v1210_v8 }
 0x5b1   :  { %1469 = vrcp.f32 %v1233_v41  ;;  %v1245_v49 = vand.u32 2147483648, %v1233_v41  ;;  %vm1239_vm13 = vweird.f32 %v1233_v41  ;;  %v1243_v55 = vand.u32 2147483647, %v1233_v41 }
 0x5b2   :  { %1295 = vmatpush.msra.mxu3 %v1262_v22  ;;  %v1223_v44 = vor.u32 1.1754944e-38, %v1222_v37  ;;  %vm1221_vm11 = vcmp.eq.f32.partialorder %v1220_v39, 8.507059e+37 }
 0x5b3   :  { %v1246_v16 = vor.u32 1.1754944e-38, %v1245_v49  ;;  %vm1244_vm15 = vcmp.eq.f32.partialorder %v1243_v55, 8.507059e+37 }
 0x5b4   :  { %1296 = vmatpush.msra.mxu3 %v1261_v30 }
 0x5b6   :  { %v1468_v51 = vpop.eup %1467 }
 0x5b7   :  { %v1470_v17 = vpop.eup %1469  ;;  %v1212_v21 = vmul.f32 %v1468_v51, %v1210_v8  ;;  %vm1217_vm8 = vweird.f32 %v1468_v51 }
 0x5b8   :  { %v1235_v23 = vmul.f32 %v1470_v17, %v1233_v41  ;;  %vm1218_vm10 = vmor %vm1216_vm9, %vm1217_vm8  ;;  %vm1240_vm12 = vweird.f32 %v1470_v17 }
 0x5b9   :  { %v1213_v27 = vsub.f32 1.0, %v1212_v21  ;;  %vm1241_vm14 = vmor %vm1239_vm13, %vm1240_vm12 }
 0x5ba   :  { %v1236_v31 = vsub.f32 1.0, %v1235_v23 }
 0x5bb   :  { %v1214_v36 = vmul.f32 %v1468_v51, %v1213_v27 }
 0x5bc   :  { %v1237_v40 = vmul.f32 %v1470_v17, %v1236_v31 }
 0x5bd   :  { %v1215_v62 = vadd.f32 %v1468_v51, %v1214_v36 }
 0x5be   :  { %v1238_v48 = vadd.f32 %v1470_v17, %v1237_v40 }
 0x5bf   :  { %v1219_v46 = vsel %vm1218_vm10, %v1468_v51, %v1215_v62 }
 0x5c0   :  { %v1224_v47 = vsel %vm1221_vm11, %v1223_v44, %v1219_v46  ;;  %v1242_v12 = vsel %vm1241_vm14, %v1470_v17, %v1238_v48 }
 0x5c1   :  { %v1249_v50 = vmul.f32 %v1224_v47, %v1204_v45  ;;  %v1247_v33 = vsel %vm1244_vm15, %v1246_v16, %v1242_v12 }
 0x5c2   :  { %v1254_v24 = vsub.f32 1.0, %v1247_v33  ;;  %v1256_v32 = vmul.f32 %v1247_v33, %v2423_v3 }
 0x5c3   :  { %v1252_v57 = vadd.f32 %v1250_v52, %v1249_v50 }
 0x5c5   :  { %1471 = vtanh.f32 %v1252_v57 }
 0x5cb   :  { %v1472_v14 = vpop.eup %1471 }
 0x5cc   :  { %v1255_v61 = vmul.f32 %v1472_v14, %v1254_v24 }
 0x5ce   :  { %v1257_v42 = vadd.f32 %v1256_v32, %v1255_v61 }
 0x5d0   :  { %1258 = vst [vmem:[#allocation4 + $0x7] sm:$0x1] %v1257_v42 }
 0x5d1   :  { %1259 = vst [vmem:[#allocation17] sm:$0x1] %v1257_v42 }
 0x5d2   :  { %1334 = dma.vmem_to_hbm [thread:$0]  %s1330_s11, 16, %s1332_s14, [#allocation18]  }
 0x5d7   :  { %v1260_v2 = vld [vmem:[#allocation4] sm:$0xff] }
 0x5d8   :  { %1297 = vmatmul.f32.vlgmr.msra.gmra.mxu3 %v1260_v2 }
 0x65b   :  { %v1298_v53 = vpop.f32.mrf.mxu3 }
 0x65c   :  { %v1299_v11 = vadd.f32 %v1392_v34, %v1298_v53 }
 0x65e   :  { %1301 = vmax.xlane.f32.xlu0 %v1299_v11 }
 0x6d1   :  { %v1302_v10 = vpop.xlane.xlu0 %1301 }
 0x6d2   :  { %v1303_v35 = vsub.f32 %v1299_v11, %v1302_v10 }
 0x6d4   :  { %v1304_v5 = vmul.f32 1.442695, %v1303_v35 }
 0x6d6   :  { %1473 = vpow2.f32 %v1304_v5 }
 0x6dc   :  { %v1474_v7 = vpop.eup %1473 }
 0x6dd   :  { %1306 = vadd.xlane.f32.xlu0 %v1474_v7 }
 0x750   :  { %v1307_v3 = vpop.xlane.xlu0 %1306 }
 0x751   :  { %1475 = vlog2.f32 %v1307_v3 }
 0x757   :  { %v1476_v6 = vpop.eup %1475 }
 0x758   :  { %v1309_v20 = vmul.f32 0.6931472, %v1476_v6 }
 0x75a   :  { %v1310_v9 = vadd.f32 %v1309_v20, %v1302_v10 }
 0x75c   :  { %v1311_v18 = vsub.f32 %v1299_v11, %v1310_v9 }
 0x75e   :  { %1312 = vst [vmem:[#allocation16] sm:$0xff] %v1311_v18 }
 0x75f   :  { %1323 = dma.vmem_to_hbm [thread:$0]  %s1319_s1, 128, %s1321_s3, [#allocation7]  }
 0x760   :  { %1713 = dma.done.wait [#allocation7], 128  }
 0x761   :  { %1714 = vsyncadd [#allocation7], 4294967168 }
 0x762   :  { %1715 = dma.done.wait [#allocation18], 16  }
 0x763   :  { %1716 = vsyncadd [#allocation18], 4294967280 }
 0x764   :  { %1343 = vsyncpa [#allocation6], 1 }
 0x765   :  { %1344 = vsyncpa [#allocation11], 1 }
 0x766   :  { %1345 = vsyncpa [#allocation14], 1 }
 0x767   :  { %1346 = vsyncpa [#allocation7], 1 }
 0x768   :  { %1347 = vsyncpa [#allocation18], 1 }
 0x769   :  { %1348 = vsyncpa [#allocation8], 1 }

</bundles_post_ra>
